<compile_context>
chip_gen: v7x
topology: tpu7x:2x2x1
jax: 0.10.0
libtpu: 0.0.40
codegen_flags: <defaults>
</compile_context>

<pallas_src>
import functools

import jax
import jax.numpy as jnp
from jax import lax
from jax.experimental import pallas as pl
from jax.experimental.pallas import tpu as pltpu


# ---------------------------------------------------------------------------
# Kernel 1: Conv_Encoder  (conv1d k=1  ->  ReLU  ->  mean pool over sentence)
#   x_ref : (TILE_N*S, E) bf16   flattened word embeddings (sentence-major rows)
#   w_ref : (E, C)        bf16   conv1d weight (transposed)
#   b_ref : (1, C)        f32    conv1d bias
#   o_ref : (TILE_N, C)   f32    per-sentence encoding
# ---------------------------------------------------------------------------
def _encoder_kernel(x_ref, w_ref, b_ref, o_ref):
    tile_n = o_ref.shape[0]
    s = x_ref.shape[0] // tile_n
    c = w_ref.shape[1]
    h = jnp.dot(x_ref[...], w_ref[...], preferred_element_type=jnp.float32) + b_ref[...]
    h = jnp.maximum(h, 0.0)
    # Mean-pool each sentence's contiguous block of S rows with a single reshaped
    # reduction (S is sublane-aligned, so no per-sentence slice/concat copies).
    pooled = jnp.sum(h.reshape(tile_n, s, c), axis=1)
    o_ref[...] = pooled * (1.0 / s)


def _pick_encoder_tile(n_sent, sent_len, emb_dim, enc_dim,
                       vmem_block_budget=8 * 1024 * 1024):
    """Largest aligned divisor of n_sent whose double-buffered blocks fit VMEM.

    Prefers tiles with >=256 MXU rows AND grid length >=2 (megacore / pipeline),
    then grid >= 2, then the largest tile that fits.
    """
    total_rows = n_sent * sent_len

    def ok(t):
        rows = t * sent_len
        if t != n_sent and t % 8 != 0:            # f32 output block sublane alignment
            return False
        if rows != total_rows and rows % 16 != 0:  # bf16 input block sublane packing
            return False
        blk_bytes = 2 * (rows * emb_dim * 2 + t * enc_dim * 4)  # double-buffered in+out
        return blk_bytes <= vmem_block_budget

    valid = [t for t in range(1, n_sent + 1) if n_sent % t == 0 and ok(t)]
    if not valid:
        return n_sent                              # tiny/misaligned fallback: one block
    best = [t for t in valid if t * sent_len >= 256 and n_sent // t >= 2]
    if best:
        return max(best)
    grid2 = [t for t in valid if n_sent // t >= 2]
    if grid2:
        return max(grid2)
    return max(valid)


def encoder_forward(emb_flat, w_conv, b_conv, n_sent, sent_len):
    ns, e = emb_flat.shape
    c = w_conv.shape[1]
    tile_n = _pick_encoder_tile(n_sent, sent_len, e, c)
    grid = (n_sent // tile_n,)

    # Explicit VMEM bound derived from the chosen blocks (v7x: 64 MiB physical).
    block_bytes = 2 * (tile_n * sent_len * e * 2 + tile_n * c * 4)
    weight_bytes = e * c * 2 + c * 4
    vmem_limit = min(max(16 << 20, int(1.5 * (block_bytes + weight_bytes)) + (1 << 20)),
                     48 << 20)

    cost = pl.CostEstimate(
        flops=2 * ns * e * c + 2 * ns * c,
        transcendentals=0,
        bytes_accessed=ns * e * 2 + e * c * 2 + c * 4 + n_sent * c * 4)

    return pl.pallas_call(
        _encoder_kernel,
        out_shape=jax.ShapeDtypeStruct((n_sent, c), jnp.float32),
        grid=grid,
        in_specs=[
            pl.BlockSpec((tile_n * sent_len, e), lambda i: (i, 0)),
            pl.BlockSpec((e, c), lambda i: (0, 0)),
            pl.BlockSpec((1, c), lambda i: (0, 0)),
        ],
        out_specs=pl.BlockSpec((tile_n, c), lambda i: (i, 0)),
        compiler_params=pltpu.CompilerParams(
            dimension_semantics=("parallel",),
            vmem_limit_bytes=vmem_limit),
        cost_estimate=cost,
    )(emb_flat, w_conv, b_conv)


# ---------------------------------------------------------------------------
# Kernel 2: fused GRU + k prediction heads + InfoNCE.
#   z_ref   : (B*W, C) f32   sentence encodings, TIME-MAJOR rows (row = w*B + b)
#   wih_ref : (C, 3H)  bf16  packed [Wir | Wiz | Win]^T
#   whh_ref : (H, 3H)  bf16  packed [Whr | Whz | Whn]^T
#   bih_ref : (1, 3H)  f32   [b_ir | b_iz | b_in]
#   bhh_ref : (1, 3H)  f32   [b_hr | b_hz | b_hn]
#   wk_ref  : (H, K*H) bf16  packed prediction heads (transposed)
#   bk_ref  : (1, K*H) f32
#   out_ref : (K, 2)   f32   column 0 = nce, column 1 = accuracy
# ---------------------------------------------------------------------------
def _gru_head_nce_kernel(z_ref, wih_ref, whh_ref, bih_ref, bhh_ref,
                         wk_ref, bk_ref, out_ref, *, batch, window, k_size):
    B, W, K = batch, window, k_size
    H = whh_ref.shape[0]
    T = W - K
    kb = K * B

    # ---- GRU input projections for the WHOLE time-major slab in one matmul ----
    # (the extra K*B target rows are negligible MXU work and avoid any row gather).
    z = z_ref[...]
    xg = jnp.dot(z.astype(jnp.bfloat16), wih_ref[...],
                 preferred_element_type=jnp.float32) + bih_ref[...]          # (W*B, 3H)

    # ---- targets: rows T*B .. W*B-1 are already k-major (row k*B + b) ----
    tgt = z[T * B:W * B, :]                                                  # (K*B, C) f32

    whh = whh_ref[...]
    bhh_b = jnp.broadcast_to(bhh_ref[...], (B, 3 * H))                       # hoisted once

    # ---- GRU recurrence: h in registers, one fused (B,H)@(H,3H) per step,
    #      PyTorch gate order (r, z, n). T is static & tiny -> full unroll.
    # TODO(synk): for large T*B*3H switch to lax.fori_loop(unroll=True) with xg staged
    # in a VMEM scratch so live ranges stay under 64 vregs.
    h = jnp.zeros((B, H), jnp.float32)
    for t in range(T):
        xg_t = xg[t * B:(t + 1) * B, :]                                      # contiguous (B, 3H)
        hg = jnp.dot(h.astype(jnp.bfloat16), whh,
                     preferred_element_type=jnp.float32) + bhh_b             # (B, 3H)
        r = jax.nn.sigmoid(xg_t[:, 0:H] + hg[:, 0:H])
        zg = jax.nn.sigmoid(xg_t[:, H:2 * H] + hg[:, H:2 * H])
        ng = jnp.tanh(xg_t[:, 2 * H:3 * H] + r * hg[:, 2 * H:3 * H])
        h = (1.0 - zg) * ng + zg * h
    context = h                                                              # (B, H)

    # ---- K prediction heads fused into ONE (B,H)@(H,K*H) matmul ----
    pred_packed = jnp.dot(context.astype(jnp.bfloat16), wk_ref[...],
                          preferred_element_type=jnp.float32) + bk_ref[...]  # (B, K*H)

    # ---- logits in transposed layout, built as K lane-contiguous column blocks ----
    # logits_t[j, k*B+b] = <target_j, pred_{k*B+b}> == logits[i, j] of the reference.
    # (avoids the (B, K*H) -> (K*B, H) sublane repack entirely; matmuls stay f32)
    col_blocks = []
    for k in range(K):
        pk = pred_packed[:, k * H:(k + 1) * H]                               # (B, H)
        col_blocks.append(
            lax.dot_general(tgt, pk, (((1,), (1,)), ((), ())),
                            preferred_element_type=jnp.float32))             # (kb, B)
    logits_t = jnp.concatenate(col_blocks, axis=1)                           # (kb, kb)

    # ---- InfoNCE (softmax over targets = axis 0), first-occurrence argmax ----
    ji = lax.broadcasted_iota(jnp.int32, (kb, kb), 0)
    ii = lax.broadcasted_iota(jnp.int32, (kb, kb), 1)
    m = jnp.max(logits_t, axis=0, keepdims=True)                             # (1, kb)
    lse = jnp.log(jnp.sum(jnp.exp(logits_t - m), axis=0, keepdims=True)) + m
    diag = jnp.sum(jnp.where(ji == ii, logits_t, 0.0), axis=0, keepdims=True)
    loss = lse - diag                                                        # (1, kb)
    # Exact equality against m taken from the SAME f32 logits array (torch semantics).
    first_max = jnp.min(jnp.where(logits_t == m, ji, kb), axis=0, keepdims=True)
    label = lax.broadcasted_iota(jnp.int32, (1, kb), 1)
    correct = (first_max == label).astype(jnp.float32)                       # (1, kb)

    # ---- per-k group means via lane-masked reductions (no extra MXU push) ----
    gk = lax.broadcasted_iota(jnp.int32, (K, kb), 0)
    gi = lax.broadcasted_iota(jnp.int32, (K, kb), 1)
    in_group = (gi >= gk * B) & (gi < (gk + 1) * B)                          # (K, kb)
    inv_b = 1.0 / B
    nce = jnp.sum(jnp.where(in_group, loss, 0.0), axis=1, keepdims=True) * inv_b
    acc = jnp.sum(jnp.where(in_group, correct, 0.0), axis=1, keepdims=True) * inv_b
    out_ref[:, 0:1] = nce
    out_ref[:, 1:2] = acc


def gru_head_nce_forward(z, w_ih_t, w_hh_t, b_ih, b_hh, wk_packed, bk_packed,
                         batch, window, k_size):
    n, c = z.shape
    hdim = w_hh_t.shape[0]
    T = window - k_size
    kb = k_size * batch
    kernel = functools.partial(_gru_head_nce_kernel,
                               batch=batch, window=window, k_size=k_size)

    cost = pl.CostEstimate(
        flops=(2 * n * c * 3 * hdim + 2 * T * batch * hdim * 3 * hdim
               + 2 * batch * hdim * k_size * hdim + 2 * kb * kb * hdim
               + 12 * T * batch * hdim),
        transcendentals=3 * T * batch * hdim + kb * kb + kb,
        bytes_accessed=(n * c * 4
                        + (c * 3 * hdim + hdim * 3 * hdim + hdim * k_size * hdim) * 2
                        + (6 * hdim + k_size * hdim) * 4 + k_size * 2 * 4))

    # TODO(synk): on v7x, split the GRU recurrence by batch halves across the 2
    # TensorCores (core_map + VMEM_SHARED + core_barrier) and finish the tiny
    # kb x kb InfoNCE on core 0; kept single-core here for v5e/v6e portability.
    return pl.pallas_call(
        kernel,
        out_shape=jax.ShapeDtypeStruct((k_size, 2), jnp.float32),
        grid=(1,),
        in_specs=[
            pl.BlockSpec((n, c), lambda i: (0, 0)),
            pl.BlockSpec((c, 3 * hdim), lambda i: (0, 0)),
            pl.BlockSpec((hdim, 3 * hdim), lambda i: (0, 0)),
            pl.BlockSpec((1, 3 * hdim), lambda i: (0, 0)),
            pl.BlockSpec((1, 3 * hdim), lambda i: (0, 0)),
            pl.BlockSpec((hdim, k_size * hdim), lambda i: (0, 0)),
            pl.BlockSpec((1, k_size * hdim), lambda i: (0, 0)),
        ],
        out_specs=pl.BlockSpec((k_size, 2), lambda i: (0, 0)),
        compiler_params=pltpu.CompilerParams(
            dimension_semantics=("arbitrary",),
            vmem_limit_bytes=16 * 1024 * 1024),
        cost_estimate=cost,
    )(z, w_ih_t, w_hh_t, b_ih, b_hh, wk_packed, bk_packed)


# ---------------------------------------------------------------------------
# Full CPCv1 forward
# ---------------------------------------------------------------------------
def cpc_forward(x_tokens, params):
    B, W, S = x_tokens.shape
    N = B * W
    H = params["w_hh_t"].shape[0]
    K = params["wk_packed"].shape[1] // H

    # Transpose the TOKENS to time-major order before the gather so the encoder
    # emits z with row index w*B + b; kernel 2 then reads forward/target rows as
    # contiguous static slices (no in-kernel row gathers, no extra z transpose).
    x_tm = jnp.transpose(x_tokens, (1, 0, 2))                                # (W, B, S)
    # nn.Embedding lookup (gather) -- plain JAX glue; bf16 for the MXU operand.
    # TODO(synk): fuse this gather into the encoder (scalar-prefetch ids + DMA gather)
    # to avoid writing/re-reading the (N*S, E) slab through HBM.
    emb_flat = params["emb"][x_tm.reshape(N * S)].astype(jnp.bfloat16)       # (N*S, E)

    # Conv_Encoder (Pallas kernel 1): z rows are time-major (row = w*B + b).
    z = encoder_forward(emb_flat, params["w_conv"], params["b_conv"], N, S)  # (N, C) f32

    # GRU + prediction heads + InfoNCE (Pallas kernel 2, fully fused).
    out = gru_head_nce_forward(z, params["w_ih_t"], params["w_hh_t"],
                               params["b_ih"], params["b_hh"],
                               params["wk_packed"], params["bk_packed"],
                               B, W, K)                                      # (K, 2)
    nce = out[:, 0].reshape(1, K)
    acc = out[:, 1].reshape(1, K)
    return nce, acc


# ---------------------------------------------------------------------------
# Deterministic parameter initialization (shapes follow the nn.Module __init__),
# with weights packed/transposed for the fused kernels.
# ---------------------------------------------------------------------------
def init_params(key, vocab, emb_dim, enc_dim, ar_dim, k_size, pad_idx):
    keys = jax.random.split(key, 9)
    emb = jax.random.normal(keys[0], (vocab, emb_dim), jnp.float32)
    emb = emb.at[pad_idx].set(0.0)                       # padding_idx row -> zeros

    # Conv1d(emb_dim -> enc_dim, k=1): weight (enc, emb, 1) stored transposed (emb, enc).
    w_conv = jax.random.normal(keys[1], (emb_dim, enc_dim), jnp.float32) / jnp.sqrt(emb_dim)
    b_conv = jax.random.normal(keys[2], (1, enc_dim), jnp.float32) * 0.01

    H = ar_dim
    # PyTorch GRU layout: weight_ih (3H, E), weight_hh (3H, H), gate order (r, z, n).
    w_ih = jax.random.normal(keys[3], (3 * H, enc_dim), jnp.float32) / jnp.sqrt(H)
    w_hh = jax.random.normal(keys[4], (3 * H, H), jnp.float32) / jnp.sqrt(H)
    b_ih = jax.random.normal(keys[5], (3 * H,), jnp.float32) * 0.01
    b_hh = jax.random.normal(keys[6], (3 * H,), jnp.float32) * 0.01

    # Wk[i] = Linear(enc_dim -> ar_dim); PyTorch weight (ar, enc). Pack all heads
    # transposed along the lane axis: (enc, K*ar), column k*ar + a = Wk[k][a, :].
    wk = jax.random.normal(keys[7], (k_size, ar_dim, enc_dim), jnp.float32) / jnp.sqrt(enc_dim)
    bk = jax.random.normal(keys[8], (k_size, ar_dim), jnp.float32) * 0.01

    return dict(
        emb=emb,
        w_conv=w_conv.astype(jnp.bfloat16),
        b_conv=b_conv,
        w_ih_t=jnp.transpose(w_ih).astype(jnp.bfloat16),                 # (E, 3H)
        w_hh_t=jnp.transpose(w_hh).astype(jnp.bfloat16),                 # (H, 3H)
        b_ih=b_ih.reshape(1, 3 * H),
        b_hh=b_hh.reshape(1, 3 * H),
        wk_packed=jnp.transpose(wk, (2, 0, 1)).reshape(enc_dim, k_size * ar_dim)
                      .astype(jnp.bfloat16),                             # (enc, K*ar)
        bk_packed=bk.reshape(1, k_size * ar_dim),
    )


if __name__ == "__main__":
    # Small config: batch=2, window=8, sentence_len=16, vocab=50,
    # emb_dim=32, enc_dim=ar_dim=32 (must match for pred[i] assignment), k_size=3.
    B, W, S = 2, 8, 16
    VOCAB, EMB, ENC, AR, K, PAD = 50, 32, 32, 32, 3, 0

    key = jax.random.PRNGKey(0)
    kx, kp = jax.random.split(key)
    x = jax.random.randint(kx, (B, W, S), 0, VOCAB, dtype=jnp.int32)
    params = init_params(kp, VOCAB, EMB, ENC, AR, K, PAD)

    loss, accuracy = jax.jit(cpc_forward)(x, params)
    jax.block_until_ready((loss, accuracy))
    assert loss.shape == (1, K) and accuracy.shape == (1, K)
    print("KERNEL_OK")
</pallas_src>

<mosaic_0001>
module attributes {stable_mosaic.version = 11 : i64} {
  func.func @_encoder_kernel(%arg0: i32, %arg1: memref<128x32xbf16, #tpu.memory_space<vmem>>, %arg2: memref<32x32xbf16, #tpu.memory_space<vmem>>, %arg3: memref<1x32xf32, #tpu.memory_space<vmem>>, %arg4: memref<8x32xf32, #tpu.memory_space<vmem>>) attributes {dimension_semantics = [#tpu.dimension_semantics<parallel>], iteration_bounds = array<i64: 2>, scalar_prefetch = 0 : i64, scratch_operands = 0 : i64, tpu.core_type = #tpu.core_type<tc>, window_params = [{transform_indices = @transform_0, window_bounds = array<i64: 128, 32>}, {pipeline_mode = #tpu.pipeline_mode<synchronous>, transform_indices = @transform_1, window_bounds = array<i64: 32, 32>}, {pipeline_mode = #tpu.pipeline_mode<synchronous>, transform_indices = @transform_2, window_bounds = array<i64: 1, 32>}, {transform_indices = @transform_3, window_bounds = array<i64: 8, 32>}]} {
    %c0 = arith.constant 0 : index
    %c0_0 = arith.constant 0 : index
    %0 = vector.load %arg1[%c0, %c0_0] : memref<128x32xbf16, #tpu.memory_space<vmem>>, vector<128x32xbf16>
    %c0_1 = arith.constant 0 : index
    %c0_2 = arith.constant 0 : index
    %1 = vector.load %arg2[%c0_1, %c0_2] : memref<32x32xbf16, #tpu.memory_space<vmem>>, vector<32x32xbf16>
    %cst = arith.constant dense<0.000000e+00> : vector<128x32xf32>
    %2 = tpu.matmul %0, %1, %cst {dimension_numbers = #tpu.dot_dimension_numbers<[1], [0], [0], [1], [0, 0, 1, 1], [], []>} : vector<128x32xbf16>, vector<32x32xbf16>, vector<128x32xf32> -> vector<128x32xf32>
    %c0_3 = arith.constant 0 : index
    %c0_4 = arith.constant 0 : index
    %3 = vector.load %arg3[%c0_3, %c0_4] : memref<1x32xf32, #tpu.memory_space<vmem>>, vector<1x32xf32>
    %4 = vector.broadcast %3 : vector<1x32xf32> to vector<128x32xf32>
    %5 = arith.addf %2, %4 : vector<128x32xf32>
    %cst_5 = arith.constant 0.000000e+00 : f32
    %6 = vector.broadcast %cst_5 : f32 to vector<128x32xf32>
    %7 = arith.maximumf %5, %6 : vector<128x32xf32>
    %8 = vector.shape_cast %7 : vector<128x32xf32> to vector<8x16x32xf32>
    %cst_6 = arith.constant dense<0.000000e+00> : vector<8x32xf32>
    %9 = vector.multi_reduction <add>, %8, %cst_6 [1] : vector<8x16x32xf32> to vector<8x32xf32>
    %cst_7 = arith.constant 6.250000e-02 : f32
    %10 = vector.broadcast %cst_7 : f32 to vector<8x32xf32>
    %11 = arith.mulf %9, %10 : vector<8x32xf32>
    %c0_8 = arith.constant 0 : index
    %c0_9 = arith.constant 0 : index
    %12 = vector.load %arg4[%c0_8, %c0_9] : memref<8x32xf32, #tpu.memory_space<vmem>>, vector<8x32xf32>
    tpu.vector_store %arg4[%c0_8, %c0_9], %11 {strides = array<i32>} : memref<8x32xf32, #tpu.memory_space<vmem>>, vector<8x32xf32>,
    return
  }
  func.func @transform_0(%arg0: i32) -> (i32, i32) {
    %c0_i32 = arith.constant 0 : i32
    %c0_i32_0 = arith.constant 0 : i32
    return %arg0, %c0_i32 : i32, i32
  }
  func.func @transform_1(%arg0: i32) -> (i32, i32) {
    %c0_i32 = arith.constant 0 : i32
    %c0_i32_0 = arith.constant 0 : i32
    %c0_i32_1 = arith.constant 0 : i32
    return %c0_i32, %c0_i32_0 : i32, i32
  }
  func.func @transform_2(%arg0: i32) -> (i32, i32) {
    %c0_i32 = arith.constant 0 : i32
    %c0_i32_0 = arith.constant 0 : i32
    %c0_i32_1 = arith.constant 0 : i32
    return %c0_i32, %c0_i32_0 : i32, i32
  }
  func.func @transform_3(%arg0: i32) -> (i32, i32) {
    %c0_i32 = arith.constant 0 : i32
    %c0_i32_0 = arith.constant 0 : i32
    return %arg0, %c0_i32 : i32, i32
  }
}

module attributes {stable_mosaic.version = 11 : i64} {
  func.func @_gru_head_nce_kernel(%arg0: i32, %arg1: memref<16x32xf32, #tpu.memory_space<vmem>>, %arg2: memref<32x96xbf16, #tpu.memory_space<vmem>>, %arg3: memref<32x96xbf16, #tpu.memory_space<vmem>>, %arg4: memref<1x96xf32, #tpu.memory_space<vmem>>, %arg5: memref<1x96xf32, #tpu.memory_space<vmem>>, %arg6: memref<32x96xbf16, #tpu.memory_space<vmem>>, %arg7: memref<1x96xf32, #tpu.memory_space<vmem>>, %arg8: memref<3x2xf32, #tpu.memory_space<vmem>>) attributes {dimension_semantics = [#tpu.dimension_semantics<arbitrary>], iteration_bounds = array<i64: 1>, scalar_prefetch = 0 : i64, scratch_operands = 0 : i64, tpu.core_type = #tpu.core_type<tc>, window_params = [{pipeline_mode = #tpu.pipeline_mode<synchronous>, transform_indices = @transform_0, window_bounds = array<i64: 16, 32>}, {pipeline_mode = #tpu.pipeline_mode<synchronous>, transform_indices = @transform_1, window_bounds = array<i64: 32, 96>}, {pipeline_mode = #tpu.pipeline_mode<synchronous>, transform_indices = @transform_2, window_bounds = array<i64: 32, 96>}, {pipeline_mode = #tpu.pipeline_mode<synchronous>, transform_indices = @transform_3, window_bounds = array<i64: 1, 96>}, {pipeline_mode = #tpu.pipeline_mode<synchronous>, transform_indices = @transform_4, window_bounds = array<i64: 1, 96>}, {pipeline_mode = #tpu.pipeline_mode<synchronous>, transform_indices = @transform_5, window_bounds = array<i64: 32, 96>}, {pipeline_mode = #tpu.pipeline_mode<synchronous>, transform_indices = @transform_6, window_bounds = array<i64: 1, 96>}, {pipeline_mode = #tpu.pipeline_mode<synchronous>, transform_indices = @transform_7, window_bounds = array<i64: 3, 2>}]} {
    %c0 = arith.constant 0 : index
    %c0_0 = arith.constant 0 : index
    %0 = vector.load %arg1[%c0, %c0_0] : memref<16x32xf32, #tpu.memory_space<vmem>>, vector<16x32xf32>
    %1 = arith.truncf %0 : vector<16x32xf32> to vector<16x32xbf16>
    %c0_1 = arith.constant 0 : index
    %c0_2 = arith.constant 0 : index
    %2 = vector.load %arg2[%c0_1, %c0_2] : memref<32x96xbf16, #tpu.memory_space<vmem>>, vector<32x96xbf16>
    %cst = arith.constant dense<0.000000e+00> : vector<16x96xf32>
    %3 = tpu.matmul %1, %2, %cst {dimension_numbers = #tpu.dot_dimension_numbers<[1], [0], [0], [1], [0, 0, 1, 1], [], []>} : vector<16x32xbf16>, vector<32x96xbf16>, vector<16x96xf32> -> vector<16x96xf32>
    %c0_3 = arith.constant 0 : index
    %c0_4 = arith.constant 0 : index
    %4 = vector.load %arg4[%c0_3, %c0_4] : memref<1x96xf32, #tpu.memory_space<vmem>>, vector<1x96xf32>
    %5 = vector.broadcast %4 : vector<1x96xf32> to vector<16x96xf32>
    %6 = arith.addf %3, %5 : vector<16x96xf32>
    %7 = vector.extract_strided_slice %0 {offsets = [10, 0], sizes = [6, 32], strides = [1, 1]} : vector<16x32xf32> to vector<6x32xf32>
    %c0_5 = arith.constant 0 : index
    %c0_6 = arith.constant 0 : index
    %8 = vector.load %arg3[%c0_5, %c0_6] : memref<32x96xbf16, #tpu.memory_space<vmem>>, vector<32x96xbf16>
    %c0_7 = arith.constant 0 : index
    %c0_8 = arith.constant 0 : index
    %9 = vector.load %arg5[%c0_7, %c0_8] : memref<1x96xf32, #tpu.memory_space<vmem>>, vector<1x96xf32>
    %10 = vector.shape_cast %9 : vector<1x96xf32> to vector<1x96xf32>
    %11 = vector.broadcast %10 : vector<1x96xf32> to vector<2x96xf32>
    %cst_9 = arith.constant 0.000000e+00 : f32
    %12 = vector.broadcast %cst_9 : f32 to vector<2x32xf32>
    %13 = vector.extract_strided_slice %6 {offsets = [0, 0], sizes = [2, 96], strides = [1, 1]} : vector<16x96xf32> to vector<2x96xf32>
    %14 = arith.truncf %12 : vector<2x32xf32> to vector<2x32xbf16>
    %cst_10 = arith.constant dense<0.000000e+00> : vector<2x96xf32>
    %15 = tpu.matmul %14, %8, %cst_10 {dimension_numbers = #tpu.dot_dimension_numbers<[1], [0], [0], [1], [0, 0, 1, 1], [], []>} : vector<2x32xbf16>, vector<32x96xbf16>, vector<2x96xf32> -> vector<2x96xf32>
    %16 = arith.addf %15, %11 : vector<2x96xf32>
    %17 = vector.extract_strided_slice %13 {offsets = [0, 0], sizes = [2, 32], strides = [1, 1]} : vector<2x96xf32> to vector<2x32xf32>
    %18 = vector.extract_strided_slice %16 {offsets = [0, 0], sizes = [2, 32], strides = [1, 1]} : vector<2x96xf32> to vector<2x32xf32>
    %19 = arith.addf %17, %18 : vector<2x32xf32>
    %20 = arith.negf %19 : vector<2x32xf32>
    %21 = math.exp %20 : vector<2x32xf32>
    %cst_11 = arith.constant 1.000000e+00 : f32
    %22 = vector.broadcast %cst_11 : f32 to vector<2x32xf32>
    %23 = arith.addf %22, %21 : vector<2x32xf32>
    %24 = arith.divf %22, %23 : vector<2x32xf32>
    %25 = vector.extract_strided_slice %13 {offsets = [0, 32], sizes = [2, 32], strides = [1, 1]} : vector<2x96xf32> to vector<2x32xf32>
    %26 = vector.extract_strided_slice %16 {offsets = [0, 32], sizes = [2, 32], strides = [1, 1]} : vector<2x96xf32> to vector<2x32xf32>
    %27 = arith.addf %25, %26 : vector<2x32xf32>
    %28 = arith.negf %27 : vector<2x32xf32>
    %29 = math.exp %28 : vector<2x32xf32>
    %cst_12 = arith.constant 1.000000e+00 : f32
    %30 = vector.broadcast %cst_12 : f32 to vector<2x32xf32>
    %31 = arith.addf %30, %29 : vector<2x32xf32>
    %32 = arith.divf %30, %31 : vector<2x32xf32>
    %33 = vector.extract_strided_slice %13 {offsets = [0, 64], sizes = [2, 32], strides = [1, 1]} : vector<2x96xf32> to vector<2x32xf32>
    %34 = vector.extract_strided_slice %16 {offsets = [0, 64], sizes = [2, 32], strides = [1, 1]} : vector<2x96xf32> to vector<2x32xf32>
    %35 = arith.mulf %24, %34 : vector<2x32xf32>
    %36 = arith.addf %33, %35 : vector<2x32xf32>
    %37 = math.tanh %36 : vector<2x32xf32>
    %cst_13 = arith.constant 1.000000e+00 : f32
    %38 = vector.broadcast %cst_13 : f32 to vector<2x32xf32>
    %39 = arith.subf %38, %32 : vector<2x32xf32>
    %40 = arith.mulf %39, %37 : vector<2x32xf32>
    %41 = arith.mulf %32, %12 : vector<2x32xf32>
    %42 = arith.addf %40, %41 : vector<2x32xf32>
    %43 = vector.extract_strided_slice %6 {offsets = [2, 0], sizes = [2, 96], strides = [1, 1]} : vector<16x96xf32> to vector<2x96xf32>
    %44 = arith.truncf %42 : vector<2x32xf32> to vector<2x32xbf16>
    %cst_14 = arith.constant dense<0.000000e+00> : vector<2x96xf32>
    %45 = tpu.matmul %44, %8, %cst_14 {dimension_numbers = #tpu.dot_dimension_numbers<[1], [0], [0], [1], [0, 0, 1, 1], [], []>} : vector<2x32xbf16>, vector<32x96xbf16>, vector<2x96xf32> -> vector<2x96xf32>
    %46 = arith.addf %45, %11 : vector<2x96xf32>
    %47 = vector.extract_strided_slice %43 {offsets = [0, 0], sizes = [2, 32], strides = [1, 1]} : vector<2x96xf32> to vector<2x32xf32>
    %48 = vector.extract_strided_slice %46 {offsets = [0, 0], sizes = [2, 32], strides = [1, 1]} : vector<2x96xf32> to vector<2x32xf32>
    %49 = arith.addf %47, %48 : vector<2x32xf32>
    %50 = arith.negf %49 : vector<2x32xf32>
    %51 = math.exp %50 : vector<2x32xf32>
    %cst_15 = arith.constant 1.000000e+00 : f32
    %52 = vector.broadcast %cst_15 : f32 to vector<2x32xf32>
    %53 = arith.addf %52, %51 : vector<2x32xf32>
    %54 = arith.divf %52, %53 : vector<2x32xf32>
    %55 = vector.extract_strided_slice %43 {offsets = [0, 32], sizes = [2, 32], strides = [1, 1]} : vector<2x96xf32> to vector<2x32xf32>
    %56 = vector.extract_strided_slice %46 {offsets = [0, 32], sizes = [2, 32], strides = [1, 1]} : vector<2x96xf32> to vector<2x32xf32>
    %57 = arith.addf %55, %56 : vector<2x32xf32>
    %58 = arith.negf %57 : vector<2x32xf32>
    %59 = math.exp %58 : vector<2x32xf32>
    %cst_16 = arith.constant 1.000000e+00 : f32
    %60 = vector.broadcast %cst_16 : f32 to vector<2x32xf32>
    %61 = arith.addf %60, %59 : vector<2x32xf32>
    %62 = arith.divf %60, %61 : vector<2x32xf32>
    %63 = vector.extract_strided_slice %43 {offsets = [0, 64], sizes = [2, 32], strides = [1, 1]} : vector<2x96xf32> to vector<2x32xf32>
    %64 = vector.extract_strided_slice %46 {offsets = [0, 64], sizes = [2, 32], strides = [1, 1]} : vector<2x96xf32> to vector<2x32xf32>
    %65 = arith.mulf %54, %64 : vector<2x32xf32>
    %66 = arith.addf %63, %65 : vector<2x32xf32>
    %67 = math.tanh %66 : vector<2x32xf32>
    %cst_17 = arith.constant 1.000000e+00 : f32
    %68 = vector.broadcast %cst_17 : f32 to vector<2x32xf32>
    %69 = arith.subf %68, %62 : vector<2x32xf32>
    %70 = arith.mulf %69, %67 : vector<2x32xf32>
    %71 = arith.mulf %62, %42 : vector<2x32xf32>
    %72 = arith.addf %70, %71 : vector<2x32xf32>
    %73 = vector.extract_strided_slice %6 {offsets = [4, 0], sizes = [2, 96], strides = [1, 1]} : vector<16x96xf32> to vector<2x96xf32>
    %74 = arith.truncf %72 : vector<2x32xf32> to vector<2x32xbf16>
    %cst_18 = arith.constant dense<0.000000e+00> : vector<2x96xf32>
    %75 = tpu.matmul %74, %8, %cst_18 {dimension_numbers = #tpu.dot_dimension_numbers<[1], [0], [0], [1], [0, 0, 1, 1], [], []>} : vector<2x32xbf16>, vector<32x96xbf16>, vector<2x96xf32> -> vector<2x96xf32>
    %76 = arith.addf %75, %11 : vector<2x96xf32>
    %77 = vector.extract_strided_slice %73 {offsets = [0, 0], sizes = [2, 32], strides = [1, 1]} : vector<2x96xf32> to vector<2x32xf32>
    %78 = vector.extract_strided_slice %76 {offsets = [0, 0], sizes = [2, 32], strides = [1, 1]} : vector<2x96xf32> to vector<2x32xf32>
    %79 = arith.addf %77, %78 : vector<2x32xf32>
    %80 = arith.negf %79 : vector<2x32xf32>
    %81 = math.exp %80 : vector<2x32xf32>
    %cst_19 = arith.constant 1.000000e+00 : f32
    %82 = vector.broadcast %cst_19 : f32 to vector<2x32xf32>
    %83 = arith.addf %82, %81 : vector<2x32xf32>
    %84 = arith.divf %82, %83 : vector<2x32xf32>
    %85 = vector.extract_strided_slice %73 {offsets = [0, 32], sizes = [2, 32], strides = [1, 1]} : vector<2x96xf32> to vector<2x32xf32>
    %86 = vector.extract_strided_slice %76 {offsets = [0, 32], sizes = [2, 32], strides = [1, 1]} : vector<2x96xf32> to vector<2x32xf32>
    %87 = arith.addf %85, %86 : vector<2x32xf32>
    %88 = arith.negf %87 : vector<2x32xf32>
    %89 = math.exp %88 : vector<2x32xf32>
    %cst_20 = arith.constant 1.000000e+00 : f32
    %90 = vector.broadcast %cst_20 : f32 to vector<2x32xf32>
    %91 = arith.addf %90, %89 : vector<2x32xf32>
    %92 = arith.divf %90, %91 : vector<2x32xf32>
    %93 = vector.extract_strided_slice %73 {offsets = [0, 64], sizes = [2, 32], strides = [1, 1]} : vector<2x96xf32> to vector<2x32xf32>
    %94 = vector.extract_strided_slice %76 {offsets = [0, 64], sizes = [2, 32], strides = [1, 1]} : vector<2x96xf32> to vector<2x32xf32>
    %95 = arith.mulf %84, %94 : vector<2x32xf32>
    %96 = arith.addf %93, %95 : vector<2x32xf32>
    %97 = math.tanh %96 : vector<2x32xf32>
    %cst_21 = arith.constant 1.000000e+00 : f32
    %98 = vector.broadcast %cst_21 : f32 to vector<2x32xf32>
    %99 = arith.subf %98, %92 : vector<2x32xf32>
    %100 = arith.mulf %99, %97 : vector<2x32xf32>
    %101 = arith.mulf %92, %72 : vector<2x32xf32>
    %102 = arith.addf %100, %101 : vector<2x32xf32>
    %103 = vector.extract_strided_slice %6 {offsets = [6, 0], sizes = [2, 96], strides = [1, 1]} : vector<16x96xf32> to vector<2x96xf32>
    %104 = arith.truncf %102 : vector<2x32xf32> to vector<2x32xbf16>
    %cst_22 = arith.constant dense<0.000000e+00> : vector<2x96xf32>
    %105 = tpu.matmul %104, %8, %cst_22 {dimension_numbers = #tpu.dot_dimension_numbers<[1], [0], [0], [1], [0, 0, 1, 1], [], []>} : vector<2x32xbf16>, vector<32x96xbf16>, vector<2x96xf32> -> vector<2x96xf32>
    %106 = arith.addf %105, %11 : vector<2x96xf32>
    %107 = vector.extract_strided_slice %103 {offsets = [0, 0], sizes = [2, 32], strides = [1, 1]} : vector<2x96xf32> to vector<2x32xf32>
    %108 = vector.extract_strided_slice %106 {offsets = [0, 0], sizes = [2, 32], strides = [1, 1]} : vector<2x96xf32> to vector<2x32xf32>
    %109 = arith.addf %107, %108 : vector<2x32xf32>
    %110 = arith.negf %109 : vector<2x32xf32>
    %111 = math.exp %110 : vector<2x32xf32>
    %cst_23 = arith.constant 1.000000e+00 : f32
    %112 = vector.broadcast %cst_23 : f32 to vector<2x32xf32>
    %113 = arith.addf %112, %111 : vector<2x32xf32>
    %114 = arith.divf %112, %113 : vector<2x32xf32>
    %115 = vector.extract_strided_slice %103 {offsets = [0, 32], sizes = [2, 32], strides = [1, 1]} : vector<2x96xf32> to vector<2x32xf32>
    %116 = vector.extract_strided_slice %106 {offsets = [0, 32], sizes = [2, 32], strides = [1, 1]} : vector<2x96xf32> to vector<2x32xf32>
    %117 = arith.addf %115, %116 : vector<2x32xf32>
    %118 = arith.negf %117 : vector<2x32xf32>
    %119 = math.exp %118 : vector<2x32xf32>
    %cst_24 = arith.constant 1.000000e+00 : f32
    %120 = vector.broadcast %cst_24 : f32 to vector<2x32xf32>
    %121 = arith.addf %120, %119 : vector<2x32xf32>
    %122 = arith.divf %120, %121 : vector<2x32xf32>
    %123 = vector.extract_strided_slice %103 {offsets = [0, 64], sizes = [2, 32], strides = [1, 1]} : vector<2x96xf32> to vector<2x32xf32>
    %124 = vector.extract_strided_slice %106 {offsets = [0, 64], sizes = [2, 32], strides = [1, 1]} : vector<2x96xf32> to vector<2x32xf32>
    %125 = arith.mulf %114, %124 : vector<2x32xf32>
    %126 = arith.addf %123, %125 : vector<2x32xf32>
    %127 = math.tanh %126 : vector<2x32xf32>
    %cst_25 = arith.constant 1.000000e+00 : f32
    %128 = vector.broadcast %cst_25 : f32 to vector<2x32xf32>
    %129 = arith.subf %128, %122 : vector<2x32xf32>
    %130 = arith.mulf %129, %127 : vector<2x32xf32>
    %131 = arith.mulf %122, %102 : vector<2x32xf32>
    %132 = arith.addf %130, %131 : vector<2x32xf32>
    %133 = vector.extract_strided_slice %6 {offsets = [8, 0], sizes = [2, 96], strides = [1, 1]} : vector<16x96xf32> to vector<2x96xf32>
    %134 = arith.truncf %132 : vector<2x32xf32> to vector<2x32xbf16>
    %cst_26 = arith.constant dense<0.000000e+00> : vector<2x96xf32>
    %135 = tpu.matmul %134, %8, %cst_26 {dimension_numbers = #tpu.dot_dimension_numbers<[1], [0], [0], [1], [0, 0, 1, 1], [], []>} : vector<2x32xbf16>, vector<32x96xbf16>, vector<2x96xf32> -> vector<2x96xf32>
    %136 = arith.addf %135, %11 : vector<2x96xf32>
    %137 = vector.extract_strided_slice %133 {offsets = [0, 0], sizes = [2, 32], strides = [1, 1]} : vector<2x96xf32> to vector<2x32xf32>
    %138 = vector.extract_strided_slice %136 {offsets = [0, 0], sizes = [2, 32], strides = [1, 1]} : vector<2x96xf32> to vector<2x32xf32>
    %139 = arith.addf %137, %138 : vector<2x32xf32>
    %140 = arith.negf %139 : vector<2x32xf32>
    %141 = math.exp %140 : vector<2x32xf32>
    %cst_27 = arith.constant 1.000000e+00 : f32
    %142 = vector.broadcast %cst_27 : f32 to vector<2x32xf32>
    %143 = arith.addf %142, %141 : vector<2x32xf32>
    %144 = arith.divf %142, %143 : vector<2x32xf32>
    %145 = vector.extract_strided_slice %133 {offsets = [0, 32], sizes = [2, 32], strides = [1, 1]} : vector<2x96xf32> to vector<2x32xf32>
    %146 = vector.extract_strided_slice %136 {offsets = [0, 32], sizes = [2, 32], strides = [1, 1]} : vector<2x96xf32> to vector<2x32xf32>
    %147 = arith.addf %145, %146 : vector<2x32xf32>
    %148 = arith.negf %147 : vector<2x32xf32>
    %149 = math.exp %148 : vector<2x32xf32>
    %cst_28 = arith.constant 1.000000e+00 : f32
    %150 = vector.broadcast %cst_28 : f32 to vector<2x32xf32>
    %151 = arith.addf %150, %149 : vector<2x32xf32>
    %152 = arith.divf %150, %151 : vector<2x32xf32>
    %153 = vector.extract_strided_slice %133 {offsets = [0, 64], sizes = [2, 32], strides = [1, 1]} : vector<2x96xf32> to vector<2x32xf32>
    %154 = vector.extract_strided_slice %136 {offsets = [0, 64], sizes = [2, 32], strides = [1, 1]} : vector<2x96xf32> to vector<2x32xf32>
    %155 = arith.mulf %144, %154 : vector<2x32xf32>
    %156 = arith.addf %153, %155 : vector<2x32xf32>
    %157 = math.tanh %156 : vector<2x32xf32>
    %cst_29 = arith.constant 1.000000e+00 : f32
    %158 = vector.broadcast %cst_29 : f32 to vector<2x32xf32>
    %159 = arith.subf %158, %152 : vector<2x32xf32>
    %160 = arith.mulf %159, %157 : vector<2x32xf32>
    %161 = arith.mulf %152, %132 : vector<2x32xf32>
    %162 = arith.addf %160, %161 : vector<2x32xf32>
    %163 = arith.truncf %162 : vector<2x32xf32> to vector<2x32xbf16>
    %c0_30 = arith.constant 0 : index
    %c0_31 = arith.constant 0 : index
    %164 = vector.load %arg6[%c0_30, %c0_31] : memref<32x96xbf16, #tpu.memory_space<vmem>>, vector<32x96xbf16>
    %cst_32 = arith.constant dense<0.000000e+00> : vector<2x96xf32>
    %165 = tpu.matmul %163, %164, %cst_32 {dimension_numbers = #tpu.dot_dimension_numbers<[1], [0], [0], [1], [0, 0, 1, 1], [], []>} : vector<2x32xbf16>, vector<32x96xbf16>, vector<2x96xf32> -> vector<2x96xf32>
    %c0_33 = arith.constant 0 : index
    %c0_34 = arith.constant 0 : index
    %166 = vector.load %arg7[%c0_33, %c0_34] : memref<1x96xf32, #tpu.memory_space<vmem>>, vector<1x96xf32>
    %167 = vector.broadcast %166 : vector<1x96xf32> to vector<2x96xf32>
    %168 = arith.addf %165, %167 : vector<2x96xf32>
    %169 = vector.extract_strided_slice %168 {offsets = [0, 0], sizes = [2, 32], strides = [1, 1]} : vector<2x96xf32> to vector<2x32xf32>
    %cst_35 = arith.constant dense<0.000000e+00> : vector<6x2xf32>
    %170 = tpu.matmul %7, %169, %cst_35 {dimension_numbers = #tpu.dot_dimension_numbers<[1], [1], [0], [0], [0, 0, 1, 0], [], []>} : vector<6x32xf32>, vector<2x32xf32>, vector<6x2xf32> -> vector<6x2xf32>
    %171 = vector.extract_strided_slice %168 {offsets = [0, 32], sizes = [2, 32], strides = [1, 1]} : vector<2x96xf32> to vector<2x32xf32>
    %cst_36 = arith.constant dense<0.000000e+00> : vector<6x2xf32>
    %172 = tpu.matmul %7, %171, %cst_36 {dimension_numbers = #tpu.dot_dimension_numbers<[1], [1], [0], [0], [0, 0, 1, 0], [], []>} : vector<6x32xf32>, vector<2x32xf32>, vector<6x2xf32> -> vector<6x2xf32>
    %173 = vector.extract_strided_slice %168 {offsets = [0, 64], sizes = [2, 32], strides = [1, 1]} : vector<2x96xf32> to vector<2x32xf32>
    %cst_37 = arith.constant dense<0.000000e+00> : vector<6x2xf32>
    %174 = tpu.matmul %7, %173, %cst_37 {dimension_numbers = #tpu.dot_dimension_numbers<[1], [1], [0], [0], [0, 0, 1, 0], [], []>} : vector<6x32xf32>, vector<2x32xf32>, vector<6x2xf32> -> vector<6x2xf32>
    %175 = tpu.concatenate %170, %172, %174 in 1 : vector<6x2xf32>, vector<6x2xf32>, vector<6x2xf32> -> vector<6x6xf32>
    %176 = tpu.iota {dimensions = array<i32: 0>} : vector<6x6xi32>
    %177 = tpu.iota {dimensions = array<i32: 1>} : vector<6x6xi32>
    %cst_38 = arith.constant dense<0xFF800000> : vector<6xf32>
    %178 = vector.multi_reduction <maximumf>, %175, %cst_38 [0] : vector<6x6xf32> to vector<6xf32>
    %179 = vector.shape_cast %178 : vector<6xf32> to vector<1x6xf32>
    %180 = vector.broadcast %179 : vector<1x6xf32> to vector<6x6xf32>
    %181 = arith.subf %175, %180 : vector<6x6xf32>
    %182 = math.exp %181 : vector<6x6xf32>
    %cst_39 = arith.constant dense<0.000000e+00> : vector<6xf32>
    %183 = vector.multi_reduction <add>, %182, %cst_39 [0] : vector<6x6xf32> to vector<6xf32>
    %184 = vector.shape_cast %183 : vector<6xf32> to vector<1x6xf32>
    %185 = math.log %184 : vector<1x6xf32>
    %186 = arith.addf %185, %179 : vector<1x6xf32>
    %187 = arith.cmpi eq, %176, %177 : vector<6x6xi32>
    %cst_40 = arith.constant 0.000000e+00 : f32
    %188 = vector.broadcast %cst_40 : f32 to vector<6x6xf32>
    %189 = arith.select %187, %175, %188 : vector<6x6xi1>, vector<6x6xf32>
    %cst_41 = arith.constant dense<0.000000e+00> : vector<6xf32>
    %190 = vector.multi_reduction <add>, %189, %cst_41 [0] : vector<6x6xf32> to vector<6xf32>
    %191 = vector.shape_cast %190 : vector<6xf32> to vector<1x6xf32>
    %192 = arith.subf %186, %191 : vector<1x6xf32>
    %193 = vector.broadcast %179 : vector<1x6xf32> to vector<6x6xf32>
    %194 = arith.cmpf oeq, %175, %193 : vector<6x6xf32>
    %c6_i32 = arith.constant 6 : i32
    %195 = vector.broadcast %c6_i32 : i32 to vector<6x6xi32>
    %196 = arith.select %194, %176, %195 : vector<6x6xi1>, vector<6x6xi32>
    %cst_42 = arith.constant dense<2147483647> : vector<6xi32>
    %197 = vector.multi_reduction <minsi>, %196, %cst_42 [0] : vector<6x6xi32> to vector<6xi32>
    %198 = vector.shape_cast %197 : vector<6xi32> to vector<1x6xi32>
    %199 = tpu.iota {dimensions = array<i32: 1>} : vector<1x6xi32>
    %200 = arith.cmpi eq, %198, %199 : vector<1x6xi32>
    %201 = arith.extui %200 : vector<1x6xi1> to vector<1x6xi32>
    %202 = arith.sitofp %201 : vector<1x6xi32> to vector<1x6xf32>
    %203 = tpu.iota {dimensions = array<i32: 0>} : vector<3x6xi32>
    %204 = tpu.iota {dimensions = array<i32: 1>} : vector<3x6xi32>
    %c2_i32 = arith.constant 2 : i32
    %205 = vector.broadcast %c2_i32 : i32 to vector<3x6xi32>
    %206 = arith.muli %203, %205 : vector<3x6xi32>
    %207 = arith.cmpi sge, %204, %206 : vector<3x6xi32>
    %c1_i32 = arith.constant 1 : i32
    %208 = vector.broadcast %c1_i32 : i32 to vector<3x6xi32>
    %209 = arith.addi %203, %208 : vector<3x6xi32>
    %c2_i32_43 = arith.constant 2 : i32
    %210 = vector.broadcast %c2_i32_43 : i32 to vector<3x6xi32>
    %211 = arith.muli %209, %210 : vector<3x6xi32>
    %212 = arith.cmpi slt, %204, %211 : vector<3x6xi32>
    %213 = arith.andi %207, %212 : vector<3x6xi1>
    %cst_44 = arith.constant 0.000000e+00 : f32
    %214 = vector.shape_cast %192 : vector<1x6xf32> to vector<1x6xf32>
    %215 = vector.broadcast %214 : vector<1x6xf32> to vector<3x6xf32>
    %216 = vector.broadcast %cst_44 : f32 to vector<3x6xf32>
    %217 = arith.select %213, %215, %216 : vector<3x6xi1>, vector<3x6xf32>
    %cst_45 = arith.constant dense<0.000000e+00> : vector<3xf32>
    %218 = vector.multi_reduction <add>, %217, %cst_45 [1] : vector<3x6xf32> to vector<3xf32>
    %219 = vector.shape_cast %218 : vector<3xf32> to vector<3x1xf32>
    %cst_46 = arith.constant 5.000000e-01 : f32
    %220 = vector.broadcast %cst_46 : f32 to vector<3x1xf32>
    %221 = arith.mulf %219, %220 : vector<3x1xf32>
    %cst_47 = arith.constant 0.000000e+00 : f32
    %222 = vector.shape_cast %202 : vector<1x6xf32> to vector<1x6xf32>
    %223 = vector.broadcast %222 : vector<1x6xf32> to vector<3x6xf32>
    %224 = vector.broadcast %cst_47 : f32 to vector<3x6xf32>
    %225 = arith.select %213, %223, %224 : vector<3x6xi1>, vector<3x6xf32>
    %cst_48 = arith.constant dense<0.000000e+00> : vector<3xf32>
    %226 = vector.multi_reduction <add>, %225, %cst_48 [1] : vector<3x6xf32> to vector<3xf32>
    %227 = vector.shape_cast %226 : vector<3xf32> to vector<3x1xf32>
    %cst_49 = arith.constant 5.000000e-01 : f32
    %228 = vector.broadcast %cst_49 : f32 to vector<3x1xf32>
    %229 = arith.mulf %227, %228 : vector<3x1xf32>
    %c0_50 = arith.constant 0 : index
    %c0_51 = arith.constant 0 : index
    %230 = vector.load %arg8[%c0_50, %c0_51] : memref<3x2xf32, #tpu.memory_space<vmem>>, vector<3x1xf32>
    tpu.vector_store %arg8[%c0_50, %c0_51], %221 {strides = array<i32>} : memref<3x2xf32, #tpu.memory_space<vmem>>, vector<3x1xf32>,
    %c0_52 = arith.constant 0 : index
    %c1 = arith.constant 1 : index
    %231 = vector.load %arg8[%c0_52, %c1] : memref<3x2xf32, #tpu.memory_space<vmem>>, vector<3x1xf32>
    tpu.vector_store %arg8[%c0_52, %c1], %229 {strides = array<i32>} : memref<3x2xf32, #tpu.memory_space<vmem>>, vector<3x1xf32>,
    return
  }
  func.func @transform_0(%arg0: i32) -> (i32, i32) {
    %c0_i32 = arith.constant 0 : i32
    %c0_i32_0 = arith.constant 0 : i32
    %c0_i32_1 = arith.constant 0 : i32
    return %c0_i32, %c0_i32_0 : i32, i32
  }
  func.func @transform_1(%arg0: i32) -> (i32, i32) {
    %c0_i32 = arith.constant 0 : i32
    %c0_i32_0 = arith.constant 0 : i32
    %c0_i32_1 = arith.constant 0 : i32
    return %c0_i32, %c0_i32_0 : i32, i32
  }
  func.func @transform_2(%arg0: i32) -> (i32, i32) {
    %c0_i32 = arith.constant 0 : i32
    %c0_i32_0 = arith.constant 0 : i32
    %c0_i32_1 = arith.constant 0 : i32
    return %c0_i32, %c0_i32_0 : i32, i32
  }
  func.func @transform_3(%arg0: i32) -> (i32, i32) {
    %c0_i32 = arith.constant 0 : i32
    %c0_i32_0 = arith.constant 0 : i32
    %c0_i32_1 = arith.constant 0 : i32
    return %c0_i32, %c0_i32_0 : i32, i32
  }
  func.func @transform_4(%arg0: i32) -> (i32, i32) {
    %c0_i32 = arith.constant 0 : i32
    %c0_i32_0 = arith.constant 0 : i32
    %c0_i32_1 = arith.constant 0 : i32
    return %c0_i32, %c0_i32_0 : i32, i32
  }
  func.func @transform_5(%arg0: i32) -> (i32, i32) {
    %c0_i32 = arith.constant 0 : i32
    %c0_i32_0 = arith.constant 0 : i32
    %c0_i32_1 = arith.constant 0 : i32
    return %c0_i32, %c0_i32_0 : i32, i32
  }
  func.func @transform_6(%arg0: i32) -> (i32, i32) {
    %c0_i32 = arith.constant 0 : i32
    %c0_i32_0 = arith.constant 0 : i32
    %c0_i32_1 = arith.constant 0 : i32
    return %c0_i32, %c0_i32_0 : i32, i32
  }
  func.func @transform_7(%arg0: i32) -> (i32, i32) {
    %c0_i32 = arith.constant 0 : i32
    %c0_i32_0 = arith.constant 0 : i32
    %c0_i32_1 = arith.constant 0 : i32
    return %c0_i32, %c0_i32_0 : i32, i32
  }
}

</mosaic_0001>

<bundles_post_ra>
// kernel: cpc_forward.2
= control target key start
LH: loop header
LB: loop body
LE: loop exit
PB: predicated region body
PF: predicated region fallthrough
CT: control target
= control target key end

     0   :  { %s655_s12 = smov 0   ;;  %s730_s0 = inlined_call_operand.vmem [shape: bf16[256,32], index: 0, kind: input, shape index: {}]   ;;  %s731_s1 = inlined_call_operand.vmem [shape: bf16[32,32], index: 1, kind: input, shape index: {}]   ;;  %s732_s2 = inlined_call_operand.vmem [shape: f32[1,32], index: 2, kind: input, shape index: {}]   ;;  %s733_s3 = inlined_call_operand.vmem [shape: f32[16,32], index: 3, kind: output, shape index: {}]  }
   0x1 LB: > { %s661_s13 = sadd.s32 4294967295, %s633_s12   ;;  %p550_p0 = scmp.ge.s32.totalorder %s633_s12, 1  ;;  %s633_s12 = sphi %s655_s12, %s13_s12  }
   0x2   : > { %p138_p1 = scmp.lt.s32.totalorder %s633_s12, 3 }
   0x4   : > { %p139_p2 = pnand %p550_p0, %p138_p1 }
   0x5   : > { %v617_v0 = vld [vmem:[%s731_s1] sm:$0xff] (!%p139_p2)   ;;  %s551_s16 = sshll.u32 (!%p139_p2), %s661_s13, 4  ;;  %v618_v1 = vld [vmem:[%s731_s1 + $0x8] sm:$0xff] (!%p139_p2)   ;;  %vm251_vm0 = vcmask (!%p139_p2), 261120   ;;  %vm477_vm1 = vcmask (!%p139_p2), 1041409   ;;  %p167_p4 = scmp.lt.s32.totalorder (!%p139_p2), %s661_s13, 1 }
   0x6   : > { %142 = sbr.rel (%p139_p2) target bundleno = 272 (0x110), region = 32  ;;  %p162_p3 = scmp.lt.s32.totalorder (!%p139_p2), %s551_s16, 31  ;;  %585 = vmatprep.subr.bf16.mxu0 (!%p139_p2), %v617_v0  ;;  %605 = vmatprep.subr.bf16.mxu1 (!%p139_p2), %v617_v0  ;;  %v686_v10 = vld [vmem:[%s732_s2] ss:$0 sm:$0xff] (!%p139_p2)  ;;  %vm479_vm2 = vcmask (!%p139_p2), 1042434   ;;  %vm481_vm3 = vcmask (!%p139_p2), 1043459  }
   0x7   : > { %586 = vmatpush3.bf16.msra.mxu0 (!%p139_p2), %v617_v0  ;;  %607 = vmatpush3.bf16.msra.mxu1 (!%p139_p2), %v617_v0  ;;  %vm483_vm4 = vcmask (!%p139_p2), 1044484   ;;  %vm485_vm5 = vcmask (!%p139_p2), 1045509   ;;  %vm487_vm6 = vcmask (!%p139_p2), 1046534   ;;  %vm489_vm7 = vcmask (!%p139_p2), 1047559  }
   0x8   : > { %587 = vmatprep.subr.bf16.mxu0 (!%p139_p2), %v618_v1  ;;  %606 = vmatprep.subr.bf16.mxu1 (!%p139_p2), %v618_v1 }
   0xb   : > { %588 = vmatpush3.bf16.msra.mxu0 (!%p139_p2), %v618_v1  ;;  %608 = vmatpush3.bf16.msra.mxu1 (!%p139_p2), %v618_v1 }
   0xd   : > { %s735_s16 = smov (!%p162_p3, %s551_s16), 31  ;;  %s737_s13 = smov (!%p167_p4, %s661_s13), 1 }
   0xe   : > { %s552_s19 = sshll.u32 %s735_s16, 2  ;;  %s553_s25 = sshll.u32 %s737_s13, 3 }
   0xf   : > { %s165_s22 = scalar_lea.vmem %s730_s0, %s552_s19  ;;  %s170_s28 = scalar_lea.vmem %s733_s3, %s553_s25 }
  0x10   : > { %v619_v2 = vld [vmem:[%s165_s22] sm:$0xff]   ;;  %v621_v4 = vld [vmem:[%s165_s22 + $0x8] sm:$0xff]   ;;  %v623_v6 = vld [vmem:[%s165_s22 + $0x10] sm:$0xff]  }
  0x11   : > { %v620_v3 = vld [vmem:[%s165_s22 + $0x20] sm:$0xff]   ;;  %589 = vmatprep.mubr.msk.bf16.mxu0 %vm251_vm0, %v619_v2  ;;  %v622_v5 = vld [vmem:[%s165_s22 + $0x28] sm:$0xff]   ;;  %v624_v7 = vld [vmem:[%s165_s22 + $0x30] sm:$0xff]  }
  0x12   : > { %597 = vmatprep.mubr.msk.bf16.mxu1 %vm251_vm0, %v620_v3  ;;  %590 = vmatmul.mubr.msk.bf16.vlgmr.msra.gmra.mrb[0].mxu0 %vm251_vm0, %v621_v4  ;;  %v625_v8 = vld [vmem:[%s165_s22 + $0x18] sm:$0xff]  }
  0x13   : > { %598 = vmatmul.mubr.msk.bf16.vlgmr.msra.gmra.mrb[0].mxu1 %vm251_vm0, %v622_v5  ;;  %593 = vmatprep.mubr.msk.bf16.mxu0 %vm251_vm0, %v623_v6  ;;  %v626_v9 = vld [vmem:[%s165_s22 + $0x38] sm:$0xff]  }
  0x14   : > { %601 = vmatprep.mubr.msk.bf16.mxu1 %vm251_vm0, %v624_v7 }
  0x1a   : > { %594 = vmatmul.mubr.msk.bf16.gmra.mrb[4].mxu0 %vm251_vm0, %v625_v8 }
  0x1b   : > { %602 = vmatmul.mubr.msk.bf16.gmra.mrb[4].mxu1 %vm251_vm0, %v626_v9 }
  0xe5   : > { %v591_v11 = vpop.f32.mrb[0].mxu0 }
  0xe6   : > { %v319_v12 = vadd.f32 %v591_v11, %v686_v10  ;;  %v599_v13 = vpop.f32.mrb[0].mxu1  ;;  %v310_v14 = vpop.f32.mrb[1].mxu0 }
  0xe7   : > { %v351_v15 = vadd.f32 %v599_v13, %v686_v10  ;;  %v311_v16 = vadd.f32 %v686_v10, %v310_v14  ;;  %v342_v17 = vpop.f32.mrb[1].mxu1  ;;  %v592_v18 = vpop.f32.mrb[2].mxu0 }
  0xe8   : > { %v375_v19 = vmax.f32 %v319_v12, 0.0  ;;  %v343_v20 = vadd.f32 %v686_v10, %v342_v17  ;;  %v322_v21 = vadd.f32 %v592_v18, %v686_v10  ;;  %v600_v22 = vpop.f32.mrb[2].mxu1  ;;  %v313_v23 = vpop.f32.mrb[3].mxu0 }
  0xe9   : > { %v383_v24 = vmax.f32 %v351_v15, 0.0  ;;  %v373_v25 = vmax.f32 %v311_v16, 0.0  ;;  %v354_v26 = vadd.f32 %v600_v22, %v686_v10  ;;  %v314_v27 = vadd.f32 %v686_v10, %v313_v23  ;;  %v345_v28 = vpop.f32.mrb[3].mxu1 }
  0xea   : > { %v381_v29 = vmax.f32 %v343_v20, 0.0  ;;  %v376_v30 = vmax.f32 %v322_v21, 0.0  ;;  %v346_v31 = vadd.f32 %v686_v10, %v345_v28  ;;  %v398_v35 = vsel %vm251_vm0, %v375_v19, 0.0 }
  0xeb   : > { %v434_v32 = vsel %vm251_vm0, %v383_v24, 0.0  ;;  %v384_v33 = vmax.f32 %v354_v26, 0.0  ;;  %v374_v34 = vmax.f32 %v314_v27, 0.0  ;;  %v389_v39 = vsel %vm251_vm0, %v373_v25, 0.0 }
  0xec   : > { %v425_v36 = vsel %vm251_vm0, %v381_v29, 0.0  ;;  %v399_v37 = vsel %vm251_vm0, %v376_v30, 0.0  ;;  %v382_v38 = vmax.f32 %v346_v31, 0.0 }
  0xed   : > { %v400_v40 = vadd.f32 %v399_v37, %v398_v35  ;;  %v435_v41 = vsel %vm251_vm0, %v384_v33, 0.0  ;;  %v390_v42 = vsel %vm251_vm0, %v374_v34, 0.0  ;;  %v595_v43 = vpop.f32.mrb[4].mxu0 }
  0xee   : > { %v436_v44 = vadd.f32 %v435_v41, %v434_v32  ;;  %v391_v45 = vadd.f32 %v390_v42, %v389_v39  ;;  %v426_v46 = vsel %vm251_vm0, %v382_v38, 0.0  ;;  %v603_v47 = vpop.f32.mrb[4].mxu1  ;;  %v326_v48 = vpop.f32.mrb[5].mxu0  ;;  %v335_v51 = vadd.f32 %v595_v43, %v686_v10 }
  0xef   : > { %v401_v49 = vrot.slane %v400_v40, 4  ;;  %v427_v50 = vadd.f32 %v426_v46, %v425_v36  ;;  %v367_v52 = vadd.f32 %v603_v47, %v686_v10  ;;  %v358_v53 = vpop.f32.mrb[5].mxu1  ;;  %v596_v54 = vpop.f32.mrb[6].mxu0  ;;  %v327_v57 = vadd.f32 %v686_v10, %v326_v48 }
  0xf0   : > { %v437_v55 = vrot.slane %v436_v44, 4  ;;  %v392_v56 = vrot.slane %v391_v45, 4  ;;  %v604_v58 = vpop.f32.mrb[6].mxu1  ;;  %v329_v59 = vpop.f32.mrb[7].mxu0  ;;  %v359_v61 = vadd.f32 %v686_v10, %v358_v53  ;;  %v379_v2 = vmax.f32 %v335_v51, 0.0 }
  0xf1   : > { %v402_v60 = vadd.f32 %v401_v49, %v400_v40  ;;  %v361_v62 = vpop.f32.mrb[7].mxu1  ;;  %v428_v0 = vrot.slane %v427_v50, 4  ;;  %v387_v3 = vmax.f32 %v367_v52, 0.0  ;;  %v377_v6 = vmax.f32 %v327_v57, 0.0 }
  0xf2   : > { %v393_v63 = vadd.f32 %v392_v56, %v391_v45  ;;  %v438_v4 = vadd.f32 %v437_v55, %v436_v44  ;;  %v338_v7 = vadd.f32 %v596_v54, %v686_v10  ;;  %v385_v9 = vmax.f32 %v359_v61, 0.0 }
  0xf3   : > { %v403_v1 = vrot.slane %v402_v60, 2  ;;  %v370_v11 = vadd.f32 %v604_v58, %v686_v10  ;;  %v330_v12 = vadd.f32 %v686_v10, %v329_v59  ;;  %v429_v14 = vadd.f32 %v428_v0, %v427_v50 }
  0xf4   : > { %v394_v5 = vrot.slane %v393_v63, 2  ;;  %v380_v15 = vmax.f32 %v338_v7, 0.0  ;;  %v362_v16 = vadd.f32 %v686_v10, %v361_v62  ;;  %v452_v18 = vsel %vm251_vm0, %v387_v3, 0.0 }
  0xf5   : > { %v404_v8 = vadd.f32 %v403_v1, %v402_v60  ;;  %v388_v19 = vmax.f32 %v370_v11, 0.0  ;;  %v378_v20 = vmax.f32 %v330_v12, 0.0  ;;  %v416_v22 = vsel %vm251_vm0, %v379_v2, 0.0 }
  0xf6   : > { %v395_v13 = vadd.f32 %v394_v5, %v393_v63  ;;  %v417_v23 = vsel %vm251_vm0, %v380_v15, 0.0  ;;  %v386_v24 = vmax.f32 %v362_v16, 0.0  ;;  %v407_v26 = vsel %vm251_vm0, %v377_v6, 0.0 }
  0xf7   : > { %v405_v17 = vrot.slane %v404_v8, 1  ;;  %v418_v27 = vadd.f32 %v417_v23, %v416_v22  ;;  %v453_v28 = vsel %vm251_vm0, %v388_v19, 0.0  ;;  %v443_v10 = vsel %vm251_vm0, %v385_v9, 0.0 }
  0xf8   : > { %v396_v21 = vrot.slane %v395_v13, 1  ;;  %v454_v30 = vadd.f32 %v453_v28, %v452_v18  ;;  %v408_v31 = vsel %vm251_vm0, %v378_v20, 0.0  ;;  %v430_v33 = vrot.slane %v429_v14, 2 }
  0xf9   : > { %v406_v25 = vadd.f32 %v405_v17, %v404_v8  ;;  %v419_v34 = vrot.slane %v418_v27, 4  ;;  %v409_v35 = vadd.f32 %v408_v31, %v407_v26  ;;  %v439_v36 = vrot.slane %v438_v4, 2 }
  0xfa   : > { %v397_v29 = vadd.f32 %v396_v21, %v395_v13  ;;  %v455_v38 = vrot.slane %v454_v30, 4  ;;  %v444_v39 = vsel %vm251_vm0, %v386_v24, 0.0  ;;  %v431_v45 = vadd.f32 %v430_v33, %v429_v14 }
  0xfb   : > { %v462_v32 = vmul.f32 0.0625, %v406_v25  ;;  %v420_v40 = vadd.f32 %v419_v34, %v418_v27  ;;  %v410_v41 = vrot.slane %v409_v35, 4  ;;  %v445_v42 = vadd.f32 %v444_v39, %v443_v10 }
  0xfc   : > { %v461_v37 = vmul.f32 0.0625, %v397_v29  ;;  %v456_v44 = vadd.f32 %v455_v38, %v454_v30  ;;  %v440_v49 = vadd.f32 %v439_v36, %v438_v4  ;;  %v432_v55 = vrot.slane %v431_v45, 1 }
  0xfd   : > { %v421_v46 = vrot.slane %v420_v40, 2  ;;  %v411_v47 = vadd.f32 %v410_v41, %v409_v35  ;;  %v446_v48 = vrot.slane %v445_v42, 4 }
  0xfe   : > { %v478_v43 = vsel %vm477_vm1, %v462_v32, %v461_v37  ;;  %v457_v50 = vrot.slane %v456_v44, 2  ;;  %v441_v59 = vrot.slane %v440_v49, 1  ;;  %v433_v0 = vadd.f32 %v432_v55, %v431_v45 }
  0xff   : > { %v422_v51 = vadd.f32 %v421_v46, %v420_v40  ;;  %v412_v52 = vrot.slane %v411_v47, 2  ;;  %v447_v53 = vadd.f32 %v446_v48, %v445_v42 }
 0x100   : > { %v458_v54 = vadd.f32 %v457_v50, %v456_v44  ;;  %v442_v3 = vadd.f32 %v441_v59, %v440_v49  ;;  %v465_v8 = vmul.f32 0.0625, %v433_v0 }
 0x101   : > { %v423_v56 = vrot.slane %v422_v51, 1  ;;  %v413_v57 = vadd.f32 %v412_v52, %v411_v47  ;;  %v448_v58 = vrot.slane %v447_v53, 2 }
 0x102   : > { %v459_v63 = vrot.slane %v458_v54, 1  ;;  %v466_v11 = vmul.f32 0.0625, %v442_v3 }
 0x103   : > { %v414_v60 = vrot.slane %v413_v57, 1  ;;  %v449_v61 = vadd.f32 %v448_v58, %v447_v53  ;;  %v424_v62 = vadd.f32 %v423_v56, %v422_v51 }
 0x104   : > { %v460_v7 = vadd.f32 %v459_v63, %v458_v54 }
 0x105   : > { %v415_v1 = vadd.f32 %v414_v60, %v413_v57  ;;  %v450_v2 = vrot.slane %v449_v61, 1  ;;  %v464_v6 = vmul.f32 0.0625, %v424_v62 }
 0x106   : > { %v468_v15 = vmul.f32 0.0625, %v460_v7 }
 0x107   : > { %v463_v4 = vmul.f32 0.0625, %v415_v1  ;;  %v451_v5 = vadd.f32 %v450_v2, %v449_v61 }
 0x109   : > { %v480_v9 = vsel %vm479_vm2, %v463_v4, %v478_v43  ;;  %v467_v13 = vmul.f32 0.0625, %v451_v5 }
 0x10a   : > { %v482_v12 = vsel %vm481_vm3, %v464_v6, %v480_v9 }
 0x10b   : > { %v484_v14 = vsel %vm483_vm4, %v465_v8, %v482_v12 }
 0x10c   : > { %v486_v16 = vsel %vm485_vm5, %v466_v11, %v484_v14 }
 0x10d   : > { %v488_v17 = vsel %vm487_vm6, %v467_v13, %v486_v16 }
 0x10e   : > { %v490_v18 = vsel %vm489_vm7, %v468_v15, %v488_v17 }
 0x10f   : > { %492 = vst.msk [vmem:[%s170_s28] sm:$0xff] %vm251_vm0, %v490_v18 }
 0x110 PF: > { %s13_s12 = sadd.s32 1, %s633_s12  }
 0x111   : > { %p10_p5 = scmp.ge.s32.totalorder %s13_s12, 4  }
 0x113   :  { %12 = sbr.rel (!%p10_p5) target bundleno = 1 (0x1), region = 62 }

// kernel: cpc_forward.3
= control target key start
LH: loop header
LB: loop body
LE: loop exit
PB: predicated region body
PF: predicated region fallthrough
CT: control target
= control target key end

     0   :  { %v1057_v0 = vmov 0.0   ;;  %vm1058_vm0 = vmmov 0   ;;  %vm53_vm1 = vcmask 261120   ;;  %v1059_v8 = vmov 0   ;;  %s1060_s14 = smov 64   ;;  %s1063_s19 = smov 4   ;;  %s1282_s1 = inlined_call_operand.vmem [shape: bf16[32,96], index: 1, kind: input, shape index: {}]   ;;  %s1283_s2 = inlined_call_operand.vmem [shape: bf16[32,96], index: 2, kind: input, shape index: {}]   ;;  %s1284_s0 = inlined_call_operand.vmem [shape: f32[16,32], index: 0, kind: input, shape index: {}]   ;;  %s1285_s4 = inlined_call_operand.vmem [shape: f32[1,96], index: 4, kind: input, shape index: {}]   ;;  %s1286_s3 = inlined_call_operand.vmem [shape: f32[1,96], index: 3, kind: input, shape index: {}]   ;;  %s1287_s5 = inlined_call_operand.vmem [shape: bf16[32,96], index: 5, kind: input, shape index: {}]   ;;  %s1288_s6 = inlined_call_operand.vmem [shape: f32[1,96], index: 6, kind: input, shape index: {}]   ;;  %s1289_s7 = inlined_call_operand.vmem [shape: f32[3,2], index: 7, kind: output, shape index: {}]  }
   0x1   :  { %939 = vmatprep.subr.bf16.mxu0 %v1057_v0  ;;  %947 = vmatprep.subr.bf16.mxu1 %v1057_v0  ;;  %v1017_v1 = vld [vmem:[%s1282_s1] sm:$0xff]   ;;  %v1019_v3 = vld [vmem:[%s1282_s1 + $0x8] sm:$0xff]   ;;  %vm806_vm2 = vcmask 15360   ;;  %vm808_vm3 = vcmask 31744   ;;  %vm814_vm4 = vcmask 46080   ;;  %vm867_vm14 = vcmask 43008  }
   0x2   :  { %v1112_v2 = vld [vmem:[%s1283_s2] sm:$0xff]   ;;  %943 = vmatprep.mubr.msk.bf16.mxu0 %vm1058_vm0, %v1057_v0  ;;  %951 = vmatprep.mubr.msk.bf16.mxu1 %vm1058_vm0, %v1057_v0  ;;  %v1126_v4 = vld [vmem:[%s1283_s2 + $0x8] sm:$0xff]   ;;  %vm877_vm15 = vcmask 2048  }
   0x3   :  { %940 = vmatpush3.bf16.msra.mxu0 %v1017_v1  ;;  %948 = vmatpush3.bf16.msra.mxu1 %v1112_v2  ;;  %v27_v5 = vld [vmem:[%s1284_s0] sm:$0xff]  ;;  %v1135_v6 = vld [vmem:[%s1284_s0 + $0x8] sm:$0xff] }
   0x4   :  { %941 = vmatprep.subr.bf16.mxu0 %v1057_v0  ;;  %949 = vmatprep.subr.bf16.mxu1 %v1057_v0  ;;  %v29_v7 = vpack.c.bf16 %v1135_v6, %v27_v5  ;;  %v1157_v9 = vld [vmem:[%s1285_s4] ss:$0 sm:$0xff] }
   0x5   :  { %v885_v13 = vld [vmem:[%s1286_s3] ss:$0 sm:$0xff]  ;;  %s1061_s3 = smov 96  }
   0x7   :  { %942 = vmatpush3.bf16.msra.mxu0 %v1019_v3  ;;  %950 = vmatpush3.bf16.msra.mxu1 %v1126_v4 }
   0x8   :  { %955 = vmatprep.subr.bf16.mxu0 %v1057_v0  ;;  %963 = vmatprep.subr.bf16.mxu1 %v1057_v0 }
   0xa   :  { %944 = vmatmul.mubr.msk.bf16.vlgmr.msra.gmra.mrb[0].mxu0 %vm53_vm1, %v29_v7  ;;  %952 = vmatmul.mubr.bf16.vlgmr.msra.gmra.mrb[0].mxu1 %v1059_v8 }
   0xb   :  { %956 = vmatpush3.bf16.msra.mxu0 %v1112_v2  ;;  %959 = vmatprep.mubr.msk.bf16.mxu0 %vm1058_vm0, %v1057_v0 }
   0xc   :  { %957 = vmatprep.subr.bf16.mxu0 %v1057_v0  ;;  %964 = vmatpush3.bf16.msra.mxu1 %v1112_v2 }
   0xd   :  { %967 = vmatprep.mubr.msk.bf16.mxu1 %vm1058_vm0, %v1057_v0  ;;  %965 = vmatprep.subr.bf16.mxu1 %v1057_v0 }
   0xf   :  { %958 = vmatpush3.bf16.msra.mxu0 %v1126_v4 }
  0x10   :  { %971 = vmatprep.subr.bf16.mxu0 %v1057_v0  ;;  %966 = vmatpush3.bf16.msra.mxu1 %v1126_v4 }
  0x11   :  { %979 = vmatprep.subr.bf16.mxu1 %v1057_v0 }
  0xdd   :  { %v91_v10 = vpop.f32.mrb[0].mxu0  ;;  %v158_v11 = vpop.f32.mrb[0].mxu1 }
  0xde   :  { %v945_v12 = vpop.f32.mrb[1].mxu0  ;;  %v159_v14 = vadd.f32 %v1157_v9, %v158_v11  ;;  %v953_v15 = vpop.f32.mrb[1].mxu1  ;;  %v1166_v21 = vadd.f32 %v885_v13, %v91_v10 }
  0xdf   :  { %v94_v16 = vpop.f32.mrb[2].mxu0  ;;  %v161_v17 = vpop.f32.mrb[2].mxu1 }
  0xe0   :  { %v1163_v18 = vadd.f32 %v885_v13, %v94_v16  ;;  %v946_v19 = vpop.f32.mrb[3].mxu0  ;;  %172 = vrot.lane.b32.xlu0 %v159_v14, %s1060_s14  ;;  %v954_v20 = vpop.f32.mrb[3].mxu1  ;;  %v164_v22 = vadd.f32 %v159_v14, %v1166_v21 }
  0xe2   :  { %v892_v23 = vmul.f32 -1.442695, %v164_v22 }
  0xe4   :  { %1023 = vpow2.f32 %v892_v23 }
  0xee   :  { %v1024_v24 = vpop.eup %1023 }
  0xef   :  { %v168_v25 = vadd.f32 1.0, %v1024_v24 }
  0xf1   :  { %1025 = vrcp.f32 %v168_v25 }
  0xfb   :  { %v1026_v26 = vpop.eup %1025 }
  0xfc   :  { %v182_v32 = vsub.f32 1.0, %v1026_v26  ;;  %v188_v34 = vmul.f32 0.0, %v1026_v26 }
 0x152   :  { %v173_v27 = vpop.permute.xlu0 %172 }
 0x153   :  { %v175_v28 = vmul.f32 %v1026_v26, %v173_v27 }
 0x155   :  { %177 = vrot.lane.b32.xlu0 %v175_v28, %s1060_s14 }
 0x1c7   :  { %v178_v29 = vpop.permute.xlu0 %177 }
 0x1c8   :  { %v180_v30 = vadd.f32 %v178_v29, %v1166_v21 }
 0x1ca   :  { %1027 = vtanh.f32 %v180_v30 }
 0x1d4   :  { %v1028_v31 = vpop.eup %1027 }
 0x1d5   :  { %184 = vrot.lane.b32.xlu1 %v1028_v31, %s1061_s3 }
 0x247   :  { %v185_v33 = vpop.permute.xlu1 %184 }
 0x248   :  { %v187_v35 = vmul.f32 %v185_v33, %v182_v32 }
 0x24a   :  { %v189_v36 = vadd.f32 %v188_v34, %v187_v35 }
 0x24c   :  { %v190_v37 = vpack.c.bf16 %v189_v36, %v189_v36  ;;  %v264_v55 = vrot.slane %v189_v36, 6 }
 0x24e   :  { %192 = vrot.lane.b32.xlu1 %v190_v37, %s1061_s3 }
 0x2c0   :  { %v193_v38 = vpop.permute.xlu1 %192 }
 0x2c1   :  { %960 = vmatmul.mubr.msk.bf16.vlgmr.msra.gmra.mrb[4].mxu0 %vm53_vm1, %v193_v38 }
 0x2c2   :  { %972 = vmatpush3.bf16.msra.mxu0 %v1112_v2  ;;  %975 = vmatprep.mubr.msk.bf16.mxu0 %vm1058_vm0, %v1057_v0 }
 0x2c3   :  { %973 = vmatprep.subr.bf16.mxu0 %v1057_v0 }
 0x2c6   :  { %974 = vmatpush3.bf16.msra.mxu0 %v1126_v4 }
 0x2c7   :  { %987 = vmatprep.subr.bf16.mxu0 %v1057_v0 }
 0x394   :  { %v231_v39 = vpop.f32.mrb[4].mxu0 }
 0x395   :  { %v232_v40 = vadd.f32 %v1157_v9, %v231_v39  ;;  %v961_v41 = vpop.f32.mrb[5].mxu0 }
 0x396   :  { %v234_v42 = vpop.f32.mrb[6].mxu0 }
 0x397   :  { %v238_v43 = vrot.slane %v232_v40, 6  ;;  %v962_v44 = vpop.f32.mrb[7].mxu0 }
 0x399   :  { %247 = vrot.lane.b32.xlu0 %v238_v43, %s1060_s14  ;;  %v240_v45 = vadd.f32 %v238_v43, %v1166_v21 }
 0x39b   :  { %v894_v46 = vmul.f32 -1.442695, %v240_v45 }
 0x39d   :  { %1029 = vpow2.f32 %v894_v46 }
 0x3a7   :  { %v1030_v47 = vpop.eup %1029 }
 0x3a8   :  { %v244_v48 = vadd.f32 1.0, %v1030_v47 }
 0x3aa   :  { %1031 = vrcp.f32 %v244_v48 }
 0x3b4   :  { %v1032_v49 = vpop.eup %1031 }
 0x3b5   :  { %v257_v56 = vsub.f32 1.0, %v1032_v49  ;;  %v266_v58 = vmul.f32 %v1032_v49, %v264_v55 }
 0x40b   :  { %v248_v50 = vpop.permute.xlu0 %247 }
 0x40c   :  { %v250_v51 = vmul.f32 %v1032_v49, %v248_v50 }
 0x40e   :  { %252 = vrot.lane.b32.xlu1 %v250_v51, %s1060_s14 }
 0x480   :  { %v253_v52 = vpop.permute.xlu1 %252 }
 0x481   :  { %v255_v53 = vadd.f32 %v253_v52, %v1166_v21 }
 0x483   :  { %1033 = vtanh.f32 %v255_v53 }
 0x48d   :  { %v1034_v54 = vpop.eup %1033 }
 0x48e   :  { %259 = vrot.lane.b32.xlu0 %v1034_v54, %s1061_s3 }
 0x500   :  { %v260_v57 = vpop.permute.xlu0 %259 }
 0x501   :  { %v262_v59 = vmul.f32 %v260_v57, %v257_v56 }
 0x503   :  { %v267_v60 = vadd.f32 %v266_v58, %v262_v59 }
 0x505   :  { %v268_v61 = vpack.c.bf16 %v267_v60, %v267_v60  ;;  %v343_v20 = vrot.slane %v267_v60, 6 }
 0x507   :  { %v270_v62 = vrot.slane %v268_v61, 1 }
 0x509   :  { %271 = vrot.lane.b32.xlu1 %v270_v62, %s1061_s3 }
 0x57b   :  { %v272_v63 = vpop.permute.xlu1 %271 }
 0x57c   :  { %968 = vmatmul.mubr.msk.bf16.vlgmr.msra.gmra.mrb[4].mxu1 %vm53_vm1, %v272_v63 }
 0x57d   :  { %980 = vmatpush3.bf16.msra.mxu1 %v1112_v2  ;;  %983 = vmatprep.mubr.msk.bf16.mxu1 %vm1058_vm0, %v1057_v0 }
 0x57e   :  { %981 = vmatprep.subr.bf16.mxu1 %v1057_v0 }
 0x581   :  { %982 = vmatpush3.bf16.msra.mxu1 %v1126_v4 }
 0x582   :  { %995 = vmatprep.subr.mxu1 %v1057_v0 }
 0x64f   :  { %v310_v1 = vpop.f32.mrb[4].mxu1 }
 0x650   :  { %v311_v3 = vadd.f32 %v1157_v9, %v310_v1  ;;  %v969_v5 = vpop.f32.mrb[5].mxu1 }
 0x651   :  { %v313_v7 = vpop.f32.mrb[6].mxu1 }
 0x652   :  { %v317_v8 = vrot.slane %v311_v3, 4  ;;  %v970_v10 = vpop.f32.mrb[7].mxu1  ;;  %v1021_v7 = vld [vmem:[%s1287_s5] sm:$0xff]  }
 0x654   :  { %326 = vrot.lane.b32.xlu0 %v317_v8, %s1060_s14  ;;  %v319_v2 = vadd.f32 %v317_v8, %v1166_v21  ;;  %v1022_v8 = vld [vmem:[%s1287_s5 + $0x8] sm:$0xff]  }
 0x656   :  { %v896_v11 = vmul.f32 -1.442695, %v319_v2 }
 0x658   :  { %1035 = vpow2.f32 %v896_v11 }
 0x662   :  { %v1036_v12 = vpop.eup %1035 }
 0x663   :  { %v323_v13 = vadd.f32 1.0, %v1036_v12 }
 0x665   :  { %1037 = vrcp.f32 %v323_v13 }
 0x66f   :  { %v1038_v14 = vpop.eup %1037 }
 0x670   :  { %v336_v22 = vsub.f32 1.0, %v1038_v14  ;;  %v345_v24 = vmul.f32 %v1038_v14, %v343_v20 }
 0x6c6   :  { %v327_v4 = vpop.permute.xlu0 %326 }
 0x6c7   :  { %v329_v15 = vmul.f32 %v1038_v14, %v327_v4 }
 0x6c9   :  { %331 = vrot.lane.b32.xlu1 %v329_v15, %s1060_s14 }
 0x73b   :  { %v332_v16 = vpop.permute.xlu1 %331 }
 0x73c   :  { %v334_v17 = vadd.f32 %v332_v16, %v1166_v21  ;;  %v901_v16 = vld [vmem:[%s1288_s6] ss:$0 sm:$0xff]  ;;  %s1062_s6 = smov 2  }
 0x73e   :  { %1039 = vtanh.f32 %v334_v17 }
 0x748   :  { %v1040_v19 = vpop.eup %1039 }
 0x749   :  { %338 = vrot.lane.b32.xlu0 %v1040_v19, %s1061_s3 }
 0x7bb   :  { %v339_v23 = vpop.permute.xlu0 %338 }
 0x7bc   :  { %v341_v25 = vmul.f32 %v339_v23, %v336_v22  ;;  %v574_v23 = vrot.slane %v1135_v6, 2 }
 0x7be   :  { %v346_v26 = vadd.f32 %v345_v24, %v341_v25 }
 0x7c0   :  { %v347_v27 = vpack.c.bf16 %v346_v26, %v346_v26  ;;  %v422_v46 = vrot.slane %v346_v26, 6 }
 0x7c2   :  { %v349_v28 = vrot.slane %v347_v27, 2 }
 0x7c4   :  { %350 = vrot.lane.b32.xlu1 %v349_v28, %s1061_s3 }
 0x836   :  { %v351_v29 = vpop.permute.xlu1 %350 }
 0x837   :  { %976 = vmatmul.mubr.msk.bf16.vlgmr.msra.gmra.mrb[8].mxu0 %vm53_vm1, %v351_v29 }
 0x838   :  { %991 = vmatprep.mubr.msk.bf16.mxu0 %vm1058_vm0, %v1057_v0  ;;  %988 = vmatpush3.bf16.msra.mxu0 %v1021_v7 }
 0x839   :  { %989 = vmatprep.subr.bf16.mxu0 %v1057_v0 }
 0x83c   :  { %990 = vmatpush3.bf16.msra.mxu0 %v1022_v8 }
 0x83d   :  { %1005 = vmatprep.subr.mxu0 %v1057_v0 }
 0x90a   :  { %v389_v30 = vpop.f32.mrb[8].mxu0 }
 0x90b   :  { %v390_v31 = vadd.f32 %v1157_v9, %v389_v30  ;;  %v977_v32 = vpop.f32.mrb[9].mxu0 }
 0x90c   :  { %v392_v33 = vpop.f32.mrb[10].mxu0 }
 0x90d   :  { %v396_v34 = vrot.slane %v390_v31, 2  ;;  %v978_v35 = vpop.f32.mrb[11].mxu0 }
 0x90f   :  { %405 = vrot.lane.b32.xlu0 %v396_v34, %s1060_s14  ;;  %v398_v36 = vadd.f32 %v396_v34, %v1166_v21 }
 0x911   :  { %v898_v37 = vmul.f32 -1.442695, %v398_v36 }
 0x913   :  { %1041 = vpow2.f32 %v898_v37 }
 0x91d   :  { %v1042_v38 = vpop.eup %1041 }
 0x91e   :  { %v402_v39 = vadd.f32 1.0, %v1042_v38 }
 0x920   :  { %1043 = vrcp.f32 %v402_v39 }
 0x92a   :  { %v1044_v40 = vpop.eup %1043 }
 0x92b   :  { %v415_v47 = vsub.f32 1.0, %v1044_v40  ;;  %v424_v49 = vmul.f32 %v1044_v40, %v422_v46 }
 0x981   :  { %v406_v41 = vpop.permute.xlu0 %405 }
 0x982   :  { %v408_v42 = vmul.f32 %v1044_v40, %v406_v41  ;;  %v810_v41 = vlaneseq }
 0x984   :  { %410 = vrot.lane.b32.xlu1 %v408_v42, %s1060_s14 }
 0x9f6   :  { %v411_v43 = vpop.permute.xlu1 %410 }
 0x9f7   :  { %v413_v44 = vadd.f32 %v411_v43, %v1166_v21 }
 0x9f9   :  { %1045 = vtanh.f32 %v413_v44  ;;  %v811_v44 = vshrl.u32 %v810_v41, 7 }
 0xa03   :  { %v1046_v45 = vpop.eup %1045 }
 0xa04   :  { %417 = vrot.lane.b32.xlu0 %v1046_v45, %s1061_s3 }
 0xa76   :  { %v418_v48 = vpop.permute.xlu0 %417 }
 0xa77   :  { %v420_v50 = vmul.f32 %v418_v48, %v415_v47 }
 0xa79   :  { %v425_v51 = vadd.f32 %v424_v49, %v420_v50  ;;  %v862_v50 = vadd.s32 1, %v811_v44 }
 0xa7b   :  { %v426_v52 = vpack.c.bf16 %v425_v51, %v425_v51  ;;  %v499_v2 = vrot.slane %v425_v51, 6 }
 0xa7d   :  { %v428_v53 = vrot.slane %v426_v52, 3 }
 0xa7f   :  { %429 = vrot.lane.b32.xlu1 %v428_v53, %s1061_s3  ;;  %v860_v53 = vmul.u32 2, %v811_v44 }
 0xaf1   :  { %v430_v54 = vpop.permute.xlu1 %429 }
 0xaf2   :  { %984 = vmatmul.mubr.msk.bf16.vlgmr.msra.gmra.mrb[8].mxu1 %vm53_vm1, %v430_v54  ;;  %v863_v54 = vmul.u32 2, %v862_v50 }
 0xaf3   :  { %997 = vmatprep.mubr.msk.f32.mxu1 %vm1058_vm0, %v1057_v0 }
 0xbc5   :  { %v468_v21 = vpop.f32.mrb[8].mxu1 }
 0xbc6   :  { %v469_v55 = vadd.f32 %v1157_v9, %v468_v21  ;;  %v985_v56 = vpop.f32.mrb[9].mxu1  ;;  %v813_v21 = vand.u32 127, %v810_v41 }
 0xbc7   :  { %v471_v57 = vpop.f32.mrb[10].mxu1 }
 0xbc8   :  { %482 = vrot.lane.b32.xlu0 %v469_v55, %s1060_s14  ;;  %v986_v58 = vpop.f32.mrb[11].mxu1  ;;  %v474_v59 = vadd.f32 %v469_v55, %v1163_v18  ;;  %vm1249_vm8 = vcmp.ge.s32.totalorder %v813_v21, %v860_v53  ;;  %vm1253_vm9 = vcmp.lt.s32.totalorder %v813_v21, %v863_v54  ;;  %vm835_vm10 = vcmp.eq.s32.totalorder %v811_v44, %v813_v21 }
 0xbc9   :  { %vm865_vm12 = vmand %vm1249_vm8, %vm1253_vm9 }
 0xbca   :  { %v900_v60 = vmul.f32 -1.442695, %v474_v59 }
 0xbcc   :  { %1047 = vpow2.f32 %v900_v60 }
 0xbd6   :  { %v1048_v61 = vpop.eup %1047 }
 0xbd7   :  { %v478_v62 = vadd.f32 1.0, %v1048_v61 }
 0xbd9   :  { %1049 = vrcp.f32 %v478_v62 }
 0xbe3   :  { %v1050_v63 = vpop.eup %1049 }
 0xbe4   :  { %v501_v12 = vmul.f32 %v1050_v63, %v499_v2 }
 0xc3a   :  { %v483_v1 = vpop.permute.xlu0 %482 }
 0xc3b   :  { %v485_v3 = vmul.f32 %v1050_v63, %v483_v1 }
 0xc3d   :  { %487 = vrot.lane.b32.xlu1 %v485_v3, %s1060_s14 }
 0xcaf   :  { %v488_v5 = vpop.permute.xlu1 %487 }
 0xcb0   :  { %v490_v9 = vadd.f32 %v488_v5, %v1163_v18  ;;  %v492_v18 = vsub.f32 1.0, %v1050_v63 }
 0xcb2   :  { %1051 = vtanh.f32 %v490_v9 }
 0xcbc   :  { %v1052_v10 = vpop.eup %1051 }
 0xcbd   :  { %494 = vrot.lane.b32.xlu0 %v1052_v10, %s1061_s3 }
 0xd2f   :  { %v495_v11 = vpop.permute.xlu0 %494 }
 0xd30   :  { %v497_v13 = vmul.f32 %v495_v11, %v492_v18 }
 0xd32   :  { %v502_v14 = vadd.f32 %v501_v12, %v497_v13 }
 0xd34   :  { %v503_v4 = vpack.c.bf16 %v502_v14, %v502_v14 }
 0xd36   :  { %516 = vrot.lane.b32.xlu1 %v503_v4, %s1061_s3 }
 0xda8   :  { %v517_v15 = vpop.permute.xlu1 %516 }
 0xda9   :  { %992 = vmatmul.mubr.msk.bf16.vlgmr.msra.gmra.mrb[12].mxu0 %vm53_vm1, %v517_v15 }
 0xdaa   :  { %1007 = vmatprep.mubr.msk.f32.mxu0 %vm1058_vm0, %v1057_v0 }
 0xe7c   :  { %v567_v17 = vpop.f32.mrb[12].mxu0 }
 0xe7d   :  { %v568_v19 = vadd.f32 %v901_v16, %v567_v17  ;;  %v993_v20 = vpop.f32.mrb[13].mxu0 }
 0xe7e   :  { %v570_v22 = vpop.f32.mrb[14].mxu0 }
 0xe7f   :  { %724 = vrot.lane.b32.xlu1 %v568_v19, %s1060_s14  ;;  %650 = vrot.lane.b32.xlu0 %v568_v19, %s1061_s3  ;;  %v994_v24 = vpop.f32.mrb[15].mxu0 }
 0xe80   :  { %996 = vmatpush3.xpose.msk.msra.mxu1 %vm53_vm1, %v568_v19 }
 0xe81   :  { %1000 = vmatprep.subr.mxu1 %v1057_v0 }
 0xe83   :  { %998 = vmatmul.mubr.msk.f32.vlgmr.msra.gmra.mrb[12].mxu1 %vm53_vm1, %v574_v23 }
 0xe84   :  { %1002 = vmatprep.mubr.msk.f32.mxu1 %vm1058_vm0, %v1057_v0  ;;  %vm879_vm0 = vcmask 10248  }
 0xef1   :  { %v725_v25 = vpop.permute.xlu1 %724  ;;  %v651_v26 = vpop.permute.xlu0 %650 }
 0xef2   :  { %1001 = vmatpush3.xpose.msk.msra.mxu1 %vm53_vm1, %v651_v26  ;;  %1006 = vmatpush3.xpose.msk.msra.mxu0 %vm53_vm1, %v725_v25 }
 0xef5   :  { %1003 = vmatmul.mubr.msk.f32.vlgmr.msra.gmra.mrb[14].mxu1 %vm53_vm1, %v574_v23  ;;  %1008 = vmatmul.mubr.msk.f32.vlgmr.msra.gmra.mrb[16].mxu0 %vm53_vm1, %v574_v23 }
 0xf56   :  { %v646_v6 = vpop.f32.mrb[12].mxu1 }
 0xf57   :  { %v999_v27 = vpop.f32.mrb[13].mxu1 }
 0xfc8   :  { %v720_v28 = vpop.f32.mrb[14].mxu1  ;;  %v794_v29 = vpop.f32.mrb[16].mxu0 }
 0xfc9   :  { %799 = vrot.lane.b32.xlu0 %v720_v28, %s1062_s6  ;;  %803 = vrot.lane.b32.xlu1 %v794_v29, %s1063_s19  ;;  %v1004_v30 = vpop.f32.mrb[15].mxu1  ;;  %v1009_v31 = vpop.f32.mrb[17].mxu0 }
0x103b   :  { %v800_v32 = vpop.permute.xlu0 %799  ;;  %v804_v33 = vpop.permute.xlu1 %803 }
0x103c   :  { %v807_v34 = vsel %vm806_vm2, %v646_v6, %v800_v32 }
0x103d   :  { %v809_v35 = vsel %vm808_vm3, %v807_v34, %v804_v33 }
0x103e   :  { %v815_v36 = vsel %vm814_vm4, %v809_v35, -inf  ;;  %v836_v62 = vsel %vm835_vm10, %v809_v35, 0.0 }
0x103f   :  { %v816_v37 = vrot.slane %v815_v36, 4  ;;  %v837_v5 = vsel %vm814_vm4, %v836_v62, 0.0 }
0x1040   :  { %v838_v10 = vrot.slane %v837_v5, 4 }
0x1041   :  { %v817_v38 = vmax.f32 %v815_v36, %v816_v37 }
0x1042   :  { %v839_v11 = vadd.f32 %v838_v10, %v837_v5 }
0x1043   :  { %v818_v39 = vrot.slane %v817_v38, 2 }
0x1045   :  { %v819_v40 = vmax.f32 %v817_v38, %v818_v39 }
0x1047   :  { %v820_v42 = vrot.slane %v819_v40, 1 }
0x1049   :  { %v821_v43 = vmax.f32 %v819_v40, %v820_v42 }
0x104b   :  { %v822_v45 = vsub.f32 %v809_v35, %v821_v43  ;;  %vm845_vm5 = vcmp.eq.f32.partialorder %v809_v35, %v821_v43 }
0x104c   :  { %v846_v46 = vsel %vm845_vm5, %v811_v44, 6 }
0x104d   :  { %v823_v47 = vmul.f32 1.442695, %v822_v45  ;;  %v847_v48 = vsel %vm814_vm4, %v846_v46, 2147483647 }
0x104e   :  { %v848_v49 = vrot.slane %v847_v48, 4 }
0x104f   :  { %1053 = vpow2.f32 %v823_v47 }
0x1050   :  { %vm849_vm6 = vcmp.lt.s32.totalorder %v847_v48, %v848_v49 }
0x1051   :  { %v850_v51 = vsel %vm849_vm6, %v847_v48, %v848_v49 }
0x1052   :  { %v851_v52 = vrot.slane %v850_v51, 2 }
0x1054   :  { %vm852_vm7 = vcmp.lt.s32.totalorder %v850_v51, %v851_v52 }
0x1055   :  { %v853_v55 = vsel %vm852_vm7, %v850_v51, %v851_v52 }
0x1056   :  { %v854_v56 = vrot.slane %v853_v55, 1 }
0x1058   :  { %vm855_vm11 = vcmp.lt.s32.totalorder %v853_v55, %v854_v56 }
0x1059   :  { %v1054_v59 = vpop.eup %1053  ;;  %v856_v60 = vsel %vm855_vm11, %v853_v55, %v854_v56 }
0x105a   :  { %v825_v61 = vsel %vm814_vm4, %v1054_v59, 0.0  ;;  %vm857_vm13 = vcmp.eq.s32.totalorder %v856_v60, %v813_v21 }
0x105b   :  { %v826_v63 = vrot.slane %v825_v61, 4  ;;  %v911_v1 = vsel %vm857_vm13, 1.0, %v1057_v0  ;;  %v840_v0 = vrot.slane %v839_v11, 2 }
0x105c   :  { %v872_v3 = vsel %vm865_vm12, %v911_v1, 0.0 }
0x105d   :  { %v873_v9 = vsel %vm867_vm14, %v872_v3, 0.0  ;;  %v827_v7 = vadd.f32 %v826_v63, %v825_v61  ;;  %v841_v13 = vadd.f32 %v840_v0, %v839_v11 }
0x105e   :  { %874 = vadd.xlane.f32.xlu1 %v873_v9 }
0x105f   :  { %v828_v8 = vrot.slane %v827_v7, 2  ;;  %v842_v14 = vrot.slane %v841_v13, 1 }
0x1061   :  { %v829_v2 = vadd.f32 %v828_v8, %v827_v7  ;;  %v843_v17 = vadd.f32 %v842_v14, %v841_v13 }
0x1063   :  { %v830_v18 = vrot.slane %v829_v2, 1 }
0x1065   :  { %v831_v12 = vadd.f32 %v830_v18, %v829_v2 }
0x1067   :  { %1055 = vlog2.f32 %v831_v12 }
0x1071   :  { %v1056_v4 = vpop.eup %1055 }
0x1072   :  { %v833_v15 = vmul.f32 0.6931472, %v1056_v4 }
0x1074   :  { %v834_v16 = vadd.f32 %v833_v15, %v821_v43 }
0x1076   :  { %v844_v19 = vsub.f32 %v834_v16, %v843_v17 }
0x1078   :  { %v866_v20 = vsel %vm865_vm12, %v844_v19, 0.0 }
0x1079   :  { %v868_v22 = vsel %vm867_vm14, %v866_v20, 0.0 }
0x107a   :  { %869 = vadd.xlane.f32.xlu0 %v868_v22 }
0x10eb   :  { %v875_v23 = vpop.xlane.xlu1 %874 }
0x10ec   :  { %v876_v26 = vmul.f32 0.5, %v875_v23 }
0x1107   :  { %v870_v24 = vpop.xlane.xlu0 %869 }
0x1108   :  { %v871_v25 = vmul.f32 0.5, %v870_v24 }
0x110a   :  { %878 = vst.msk [vmem:[%s1289_s7] sm:$0x7] %vm877_vm15, %v871_v25 }
0x110b   :  { %880 = vst.msk [vmem:[%s1289_s7] sm:$0x7] %vm879_vm0, %v876_v26 }

</bundles_post_ra>
